<compile_context>
chip_gen: v6e
topology: v6e:2x2x1
jax: 0.10.0
libtpu: 0.0.40
codegen_flags: <defaults>
</compile_context>

<pallas_src>
import functools

import jax
import jax.numpy as jnp
from jax.experimental import pallas as pl
from jax.experimental.pallas import tpu as pltpu


# ----------------------------------------------------------------------------
# Kernel
# ----------------------------------------------------------------------------
def _lstm_kernel(x_ref,      # (T_chunk, B_blk, D_pad)  bf16   streamed chunk
                 wih_ref,    # (D_pad, 4*H_pad)         bf16   W_ih^T (resident)
                 whh_ref,    # (H_pad, 4*H_pad)         bf16   W_hh^T (resident)
                 b_ref,      # (1, 4*H_pad)             f32    b_ih + b_hh
                 wfc_ref,    # (H_pad, O_pad)           bf16   W_fc^T (resident)
                 bfc_ref,    # (1, O_pad)               f32
                 out_ref,    # (B_blk, O_pad)           f32
                 h_scr,      # (B_blk, H_pad)           f32    carried hidden state
                 c_scr):     # (B_blk, H_pad)           f32    carried cell state
    t_idx = pl.program_id(1)
    n_t = pl.num_programs(1)
    T_chunk, B_blk, D_pad = x_ref.shape
    H_pad = whh_ref.shape[0]

    # h0 = c0 = 0 (as in the PyTorch forward); only at the first time chunk.
    @pl.when(t_idx == 0)
    def _init():
        h_scr[...] = jnp.zeros_like(h_scr)
        c_scr[...] = jnp.zeros_like(c_scr)

    # ---- hoisted input projection: one big MXU matmul for the whole chunk ----
    x_flat = x_ref[...].reshape(T_chunk * B_blk, D_pad)                  # bf16
    g_flat = (jnp.dot(x_flat, wih_ref[...],
                      preferred_element_type=jnp.float32)
              + b_ref[...])                                              # f32

    whh = whh_ref[...]                                                   # bf16
    h = h_scr[...]                                                       # f32
    c = c_scr[...]                                                       # f32

    # ---- fully-unrolled recurrence; h/c stay in registers across steps ----
    for t in range(T_chunk):
        g_t = g_flat[t * B_blk:(t + 1) * B_blk, :]                       # (B,4H)
        gates = g_t + jnp.dot(h.astype(jnp.bfloat16), whh,
                              preferred_element_type=jnp.float32)
        i = jax.nn.sigmoid(gates[:, 0 * H_pad:1 * H_pad])
        f = jax.nn.sigmoid(gates[:, 1 * H_pad:2 * H_pad])
        g = jnp.tanh(gates[:, 2 * H_pad:3 * H_pad])
        o = jax.nn.sigmoid(gates[:, 3 * H_pad:4 * H_pad])
        c = f * c + i * g
        h = o * jnp.tanh(c)

    # carry state to the next time chunk
    h_scr[...] = h
    c_scr[...] = c

    # fc on the last timestep's hidden state (last time chunk only)
    @pl.when(t_idx == n_t - 1)
    def _final():
        out_ref[...] = (jnp.dot(h.astype(jnp.bfloat16), wfc_ref[...],
                                preferred_element_type=jnp.float32)
                        + bfc_ref[...])


# ----------------------------------------------------------------------------
# Wrapper
# ----------------------------------------------------------------------------
def _round_up(x, m):
    return (x + m - 1) // m * m


def _choose_t_chunk(T, cap=8):
    for c in range(min(T, cap), 0, -1):
        if T % c == 0:
            return c
    return 1


@functools.partial(jax.jit, static_argnames=())
def lstm_model_forward(x_btd, params):
    """x_btd: (B, T, D) float32 — same layout as the PyTorch module input."""
    w_ih, w_hh, b_ih, b_hh, w_fc, b_fc = params
    B, T, D = x_btd.shape
    H = w_hh.shape[1]            # w_hh: (4H, H)
    O = w_fc.shape[0]            # w_fc: (O, H)

    # vreg-aligned padded sizes
    D_pad = _round_up(D, 128)
    H_pad = _round_up(H, 128)
    O_pad = _round_up(O, 128)
    B_pad = _round_up(B, 16)                       # bf16 sublane pack

    # batch-block split (enables megacore sharding on v7x when B is large)
    n_b = 2 if (B_pad % 32 == 0) else 1
    B_blk = B_pad // n_b

    T_chunk = _choose_t_chunk(T, cap=8)
    n_t = T // T_chunk

    # ---- pad + transpose weights (PyTorch gate order [i, f, g, o]) ----
    def pad_gates_T(w, K, K_pad):
        # w: (4H, K) -> (K_pad, 4*H_pad), zero padding *inside* each gate block
        w4 = w.astype(jnp.float32).reshape(4, H, K)
        full = jnp.zeros((4, H_pad, K_pad), jnp.float32).at[:, :H, :K].set(w4)
        return full.reshape(4 * H_pad, K_pad).T

    wih_t = pad_gates_T(w_ih, D, D_pad).astype(jnp.bfloat16)      # (D_pad, 4H_pad)
    whh_t = pad_gates_T(w_hh, H, H_pad).astype(jnp.bfloat16)      # (H_pad, 4H_pad)

    b4 = (b_ih + b_hh).astype(jnp.float32).reshape(4, H)          # bias hoisted/summed
    b_full = (jnp.zeros((4, H_pad), jnp.float32).at[:, :H].set(b4)
              .reshape(1, 4 * H_pad))

    wfc_t = (jnp.zeros((H_pad, O_pad), jnp.float32)
             .at[:H, :O].set(w_fc.astype(jnp.float32).T)).astype(jnp.bfloat16)
    bfc_full = jnp.zeros((1, O_pad), jnp.float32).at[0, :O].set(
        b_fc.astype(jnp.float32))

    # ---- time-major, padded, bf16 input ----
    x_tbd = jnp.transpose(x_btd.astype(jnp.float32), (1, 0, 2))   # (T, B, D)
    x_pad = (jnp.zeros((T, B_pad, D_pad), jnp.float32)
             .at[:, :B, :D].set(x_tbd)).astype(jnp.bfloat16)

    # ---- VMEM budget (sized for the real footprint; safe on v7x's 64 MiB) ----
    bf16, f32 = 2, 4
    est = (2 * T_chunk * B_blk * D_pad * bf16                     # x chunk (double buf)
           + 2 * (D_pad + H_pad) * 4 * H_pad * bf16               # W_ih^T, W_hh^T
           + 2 * H_pad * O_pad * bf16                             # W_fc^T
           + 2 * (4 * H_pad + O_pad) * f32                        # biases
           + 2 * B_blk * O_pad * f32                              # out block
           + 2 * B_blk * H_pad * f32                              # h/c scratch
           + T_chunk * B_blk * 4 * H_pad * f32)                   # chunk gate preacts
    vmem_limit = int(min(max(2 * est, 32 * 1024 * 1024), 64 * 1024 * 1024))

    out = pl.pallas_call(
        _lstm_kernel,
        out_shape=jax.ShapeDtypeStruct((B_pad, O_pad), jnp.float32),
        grid=(n_b, n_t),
        in_specs=[
            pl.BlockSpec((T_chunk, B_blk, D_pad), lambda b, t: (t, b, 0)),
            pl.BlockSpec((D_pad, 4 * H_pad), lambda b, t: (0, 0)),
            pl.BlockSpec((H_pad, 4 * H_pad), lambda b, t: (0, 0)),
            pl.BlockSpec((1, 4 * H_pad), lambda b, t: (0, 0)),
            pl.BlockSpec((H_pad, O_pad), lambda b, t: (0, 0)),
            pl.BlockSpec((1, O_pad), lambda b, t: (0, 0)),
        ],
        out_specs=pl.BlockSpec((B_blk, O_pad), lambda b, t: (b, 0)),
        scratch_shapes=[
            pltpu.VMEM((B_blk, H_pad), jnp.float32),
            pltpu.VMEM((B_blk, H_pad), jnp.float32),
        ],
        compiler_params=pltpu.CompilerParams(
            dimension_semantics=("parallel", "arbitrary"),
            vmem_limit_bytes=vmem_limit),
    )(x_pad, wih_t, whh_t, b_full, wfc_t, bfc_full)

    return out[:B, :O]


# ----------------------------------------------------------------------------
# Params / reference
# ----------------------------------------------------------------------------
def init_params(key, input_dim, hidden_dim, output_dim):
    """PyTorch-shaped params, uniform(-1/sqrt(H), 1/sqrt(H))."""
    ks = jax.random.split(key, 6)
    s = 1.0 / jnp.sqrt(hidden_dim)
    w_ih = jax.random.uniform(ks[0], (4 * hidden_dim, input_dim), jnp.float32, -s, s)
    w_hh = jax.random.uniform(ks[1], (4 * hidden_dim, hidden_dim), jnp.float32, -s, s)
    b_ih = jax.random.uniform(ks[2], (4 * hidden_dim,), jnp.float32, -s, s)
    b_hh = jax.random.uniform(ks[3], (4 * hidden_dim,), jnp.float32, -s, s)
    w_fc = jax.random.uniform(ks[4], (output_dim, hidden_dim), jnp.float32, -s, s)
    b_fc = jax.random.uniform(ks[5], (output_dim,), jnp.float32, -s, s)
    return (w_ih, w_hh, b_ih, b_hh, w_fc, b_fc)


def lstm_model_reference(x_btd, params):
    """Pure-JAX f32 reference of the PyTorch forward (gate order [i,f,g,o])."""
    w_ih, w_hh, b_ih, b_hh, w_fc, b_fc = params
    B, T, D = x_btd.shape
    H = w_hh.shape[1]
    h = jnp.zeros((B, H), jnp.float32)
    c = jnp.zeros((B, H), jnp.float32)
    for t in range(T):
        gates = x_btd[:, t, :] @ w_ih.T + b_ih + h @ w_hh.T + b_hh
        i = jax.nn.sigmoid(gates[:, 0:H])
        f = jax.nn.sigmoid(gates[:, H:2 * H])
        g = jnp.tanh(gates[:, 2 * H:3 * H])
        o = jax.nn.sigmoid(gates[:, 3 * H:4 * H])
        c = f * c + i * g
        h = o * jnp.tanh(c)
    return h @ w_fc.T + b_fc


if __name__ == "__main__":
    B, T, D, H, O = 2, 16, 16, 32, 4

    key = jax.random.PRNGKey(0)
    kx, kp = jax.random.split(key)
    x = jax.random.normal(kx, (B, T, D), jnp.float32)
    params = init_params(kp, D, H, O)

    out = lstm_model_forward(x, params)
    out = jax.block_until_ready(out)

    ref = lstm_model_reference(x, params)
    assert out.shape == (B, O)
    # bf16 matmul operands (f32 accumulation) -> slightly looser tolerance vs
    # the pure-f32 reference.
    assert jnp.allclose(out, ref, atol=5e-2, rtol=5e-2), "mismatch vs reference"

    print("KERNEL_OK")
</pallas_src>

<mosaic_0001>
module attributes {stable_mosaic.version = 11 : i64} {
  func.func @_lstm_kernel(%arg0: i32, %arg1: i32, %arg2: memref<8x16x128xbf16, #tpu.memory_space<vmem>>, %arg3: memref<128x512xbf16, #tpu.memory_space<vmem>>, %arg4: memref<128x512xbf16, #tpu.memory_space<vmem>>, %arg5: memref<1x512xf32, #tpu.memory_space<vmem>>, %arg6: memref<128x128xbf16, #tpu.memory_space<vmem>>, %arg7: memref<1x128xf32, #tpu.memory_space<vmem>>, %arg8: memref<16x128xf32, #tpu.memory_space<vmem>>, %arg9: memref<16x128xf32, #tpu.memory_space<vmem>>, %arg10: memref<16x128xf32, #tpu.memory_space<vmem>>) attributes {dimension_semantics = [#tpu.dimension_semantics<parallel>, #tpu.dimension_semantics<arbitrary>], iteration_bounds = array<i64: 1, 2>, scalar_prefetch = 0 : i64, scratch_operands = 2 : i64, tpu.core_type = #tpu.core_type<tc>, window_params = [{transform_indices = @transform_0, window_bounds = array<i64: 8, 16, 128>}, {pipeline_mode = #tpu.pipeline_mode<synchronous>, transform_indices = @transform_1, window_bounds = array<i64: 128, 512>}, {pipeline_mode = #tpu.pipeline_mode<synchronous>, transform_indices = @transform_2, window_bounds = array<i64: 128, 512>}, {pipeline_mode = #tpu.pipeline_mode<synchronous>, transform_indices = @transform_3, window_bounds = array<i64: 1, 512>}, {pipeline_mode = #tpu.pipeline_mode<synchronous>, transform_indices = @transform_4, window_bounds = array<i64: 128, 128>}, {pipeline_mode = #tpu.pipeline_mode<synchronous>, transform_indices = @transform_5, window_bounds = array<i64: 1, 128>}, {transform_indices = @transform_6, window_bounds = array<i64: 16, 128>}]} {
    %c0_i32 = arith.constant 0 : i32
    %0 = arith.cmpi eq, %arg1, %c0_i32 : i32
    %1 = arith.extui %0 : i1 to i32
    %c0_i32_0 = arith.constant 0 : i32
    %2 = arith.cmpi ne, %1, %c0_i32_0 : i32
    scf.if %2 {
      %cst_50 = arith.constant 0.000000e+00 : f32
      %250 = vector.broadcast %cst_50 : f32 to vector<16x128xf32>
      %c0_51 = arith.constant 0 : index
      %c0_52 = arith.constant 0 : index
      %251 = vector.load %arg9[%c0_51, %c0_52] : memref<16x128xf32, #tpu.memory_space<vmem>>, vector<16x128xf32>
      tpu.vector_store %arg9[%c0_51, %c0_52], %250 {strides = array<i32>} : memref<16x128xf32, #tpu.memory_space<vmem>>, vector<16x128xf32>,
      %cst_53 = arith.constant 0.000000e+00 : f32
      %252 = vector.broadcast %cst_53 : f32 to vector<16x128xf32>
      %c0_54 = arith.constant 0 : index
      %c0_55 = arith.constant 0 : index
      %253 = vector.load %arg10[%c0_54, %c0_55] : memref<16x128xf32, #tpu.memory_space<vmem>>, vector<16x128xf32>
      tpu.vector_store %arg10[%c0_54, %c0_55], %252 {strides = array<i32>} : memref<16x128xf32, #tpu.memory_space<vmem>>, vector<16x128xf32>,
    } else {
    }
    %c0 = arith.constant 0 : index
    %c0_1 = arith.constant 0 : index
    %c0_2 = arith.constant 0 : index
    %3 = vector.load %arg2[%c0, %c0_1, %c0_2] : memref<8x16x128xbf16, #tpu.memory_space<vmem>>, vector<8x16x128xbf16>
    %4 = vector.shape_cast %3 : vector<8x16x128xbf16> to vector<128x128xbf16>
    %c0_3 = arith.constant 0 : index
    %c0_4 = arith.constant 0 : index
    %5 = vector.load %arg3[%c0_3, %c0_4] : memref<128x512xbf16, #tpu.memory_space<vmem>>, vector<128x512xbf16>
    %cst = arith.constant dense<0.000000e+00> : vector<128x512xf32>
    %6 = tpu.matmul %4, %5, %cst {dimension_numbers = #tpu.dot_dimension_numbers<[1], [0], [0], [1], [0, 0, 1, 1], [], []>} : vector<128x128xbf16>, vector<128x512xbf16>, vector<128x512xf32> -> vector<128x512xf32>
    %c0_5 = arith.constant 0 : index
    %c0_6 = arith.constant 0 : index
    %7 = vector.load %arg5[%c0_5, %c0_6] : memref<1x512xf32, #tpu.memory_space<vmem>>, vector<1x512xf32>
    %8 = vector.broadcast %7 : vector<1x512xf32> to vector<128x512xf32>
    %9 = arith.addf %6, %8 : vector<128x512xf32>
    %c0_7 = arith.constant 0 : index
    %c0_8 = arith.constant 0 : index
    %10 = vector.load %arg4[%c0_7, %c0_8] : memref<128x512xbf16, #tpu.memory_space<vmem>>, vector<128x512xbf16>
    %c0_9 = arith.constant 0 : index
    %c0_10 = arith.constant 0 : index
    %11 = vector.load %arg9[%c0_9, %c0_10] : memref<16x128xf32, #tpu.memory_space<vmem>>, vector<16x128xf32>
    %c0_11 = arith.constant 0 : index
    %c0_12 = arith.constant 0 : index
    %12 = vector.load %arg10[%c0_11, %c0_12] : memref<16x128xf32, #tpu.memory_space<vmem>>, vector<16x128xf32>
    %13 = vector.extract_strided_slice %9 {offsets = [0, 0], sizes = [16, 512], strides = [1, 1]} : vector<128x512xf32> to vector<16x512xf32>
    %14 = arith.truncf %11 : vector<16x128xf32> to vector<16x128xbf16>
    %cst_13 = arith.constant dense<0.000000e+00> : vector<16x512xf32>
    %15 = tpu.matmul %14, %10, %cst_13 {dimension_numbers = #tpu.dot_dimension_numbers<[1], [0], [0], [1], [0, 0, 1, 1], [], []>} : vector<16x128xbf16>, vector<128x512xbf16>, vector<16x512xf32> -> vector<16x512xf32>
    %16 = arith.addf %13, %15 : vector<16x512xf32>
    %17 = vector.extract_strided_slice %16 {offsets = [0, 0], sizes = [16, 128], strides = [1, 1]} : vector<16x512xf32> to vector<16x128xf32>
    %18 = arith.negf %17 : vector<16x128xf32>
    %19 = math.exp %18 : vector<16x128xf32>
    %cst_14 = arith.constant 1.000000e+00 : f32
    %20 = vector.broadcast %cst_14 : f32 to vector<16x128xf32>
    %21 = arith.addf %20, %19 : vector<16x128xf32>
    %22 = arith.divf %20, %21 : vector<16x128xf32>
    %23 = vector.extract_strided_slice %16 {offsets = [0, 128], sizes = [16, 128], strides = [1, 1]} : vector<16x512xf32> to vector<16x128xf32>
    %24 = arith.negf %23 : vector<16x128xf32>
    %25 = math.exp %24 : vector<16x128xf32>
    %cst_15 = arith.constant 1.000000e+00 : f32
    %26 = vector.broadcast %cst_15 : f32 to vector<16x128xf32>
    %27 = arith.addf %26, %25 : vector<16x128xf32>
    %28 = arith.divf %26, %27 : vector<16x128xf32>
    %29 = vector.extract_strided_slice %16 {offsets = [0, 256], sizes = [16, 128], strides = [1, 1]} : vector<16x512xf32> to vector<16x128xf32>
    %30 = math.tanh %29 : vector<16x128xf32>
    %31 = vector.extract_strided_slice %16 {offsets = [0, 384], sizes = [16, 128], strides = [1, 1]} : vector<16x512xf32> to vector<16x128xf32>
    %32 = arith.negf %31 : vector<16x128xf32>
    %33 = math.exp %32 : vector<16x128xf32>
    %cst_16 = arith.constant 1.000000e+00 : f32
    %34 = vector.broadcast %cst_16 : f32 to vector<16x128xf32>
    %35 = arith.addf %34, %33 : vector<16x128xf32>
    %36 = arith.divf %34, %35 : vector<16x128xf32>
    %37 = arith.mulf %28, %12 : vector<16x128xf32>
    %38 = arith.mulf %22, %30 : vector<16x128xf32>
    %39 = arith.addf %37, %38 : vector<16x128xf32>
    %40 = math.tanh %39 : vector<16x128xf32>
    %41 = arith.mulf %36, %40 : vector<16x128xf32>
    %42 = vector.extract_strided_slice %9 {offsets = [16, 0], sizes = [16, 512], strides = [1, 1]} : vector<128x512xf32> to vector<16x512xf32>
    %43 = arith.truncf %41 : vector<16x128xf32> to vector<16x128xbf16>
    %cst_17 = arith.constant dense<0.000000e+00> : vector<16x512xf32>
    %44 = tpu.matmul %43, %10, %cst_17 {dimension_numbers = #tpu.dot_dimension_numbers<[1], [0], [0], [1], [0, 0, 1, 1], [], []>} : vector<16x128xbf16>, vector<128x512xbf16>, vector<16x512xf32> -> vector<16x512xf32>
    %45 = arith.addf %42, %44 : vector<16x512xf32>
    %46 = vector.extract_strided_slice %45 {offsets = [0, 0], sizes = [16, 128], strides = [1, 1]} : vector<16x512xf32> to vector<16x128xf32>
    %47 = arith.negf %46 : vector<16x128xf32>
    %48 = math.exp %47 : vector<16x128xf32>
    %cst_18 = arith.constant 1.000000e+00 : f32
    %49 = vector.broadcast %cst_18 : f32 to vector<16x128xf32>
    %50 = arith.addf %49, %48 : vector<16x128xf32>
    %51 = arith.divf %49, %50 : vector<16x128xf32>
    %52 = vector.extract_strided_slice %45 {offsets = [0, 128], sizes = [16, 128], strides = [1, 1]} : vector<16x512xf32> to vector<16x128xf32>
    %53 = arith.negf %52 : vector<16x128xf32>
    %54 = math.exp %53 : vector<16x128xf32>
    %cst_19 = arith.constant 1.000000e+00 : f32
    %55 = vector.broadcast %cst_19 : f32 to vector<16x128xf32>
    %56 = arith.addf %55, %54 : vector<16x128xf32>
    %57 = arith.divf %55, %56 : vector<16x128xf32>
    %58 = vector.extract_strided_slice %45 {offsets = [0, 256], sizes = [16, 128], strides = [1, 1]} : vector<16x512xf32> to vector<16x128xf32>
    %59 = math.tanh %58 : vector<16x128xf32>
    %60 = vector.extract_strided_slice %45 {offsets = [0, 384], sizes = [16, 128], strides = [1, 1]} : vector<16x512xf32> to vector<16x128xf32>
    %61 = arith.negf %60 : vector<16x128xf32>
    %62 = math.exp %61 : vector<16x128xf32>
    %cst_20 = arith.constant 1.000000e+00 : f32
    %63 = vector.broadcast %cst_20 : f32 to vector<16x128xf32>
    %64 = arith.addf %63, %62 : vector<16x128xf32>
    %65 = arith.divf %63, %64 : vector<16x128xf32>
    %66 = arith.mulf %57, %39 : vector<16x128xf32>
    %67 = arith.mulf %51, %59 : vector<16x128xf32>
    %68 = arith.addf %66, %67 : vector<16x128xf32>
    %69 = math.tanh %68 : vector<16x128xf32>
    %70 = arith.mulf %65, %69 : vector<16x128xf32>
    %71 = vector.extract_strided_slice %9 {offsets = [32, 0], sizes = [16, 512], strides = [1, 1]} : vector<128x512xf32> to vector<16x512xf32>
    %72 = arith.truncf %70 : vector<16x128xf32> to vector<16x128xbf16>
    %cst_21 = arith.constant dense<0.000000e+00> : vector<16x512xf32>
    %73 = tpu.matmul %72, %10, %cst_21 {dimension_numbers = #tpu.dot_dimension_numbers<[1], [0], [0], [1], [0, 0, 1, 1], [], []>} : vector<16x128xbf16>, vector<128x512xbf16>, vector<16x512xf32> -> vector<16x512xf32>
    %74 = arith.addf %71, %73 : vector<16x512xf32>
    %75 = vector.extract_strided_slice %74 {offsets = [0, 0], sizes = [16, 128], strides = [1, 1]} : vector<16x512xf32> to vector<16x128xf32>
    %76 = arith.negf %75 : vector<16x128xf32>
    %77 = math.exp %76 : vector<16x128xf32>
    %cst_22 = arith.constant 1.000000e+00 : f32
    %78 = vector.broadcast %cst_22 : f32 to vector<16x128xf32>
    %79 = arith.addf %78, %77 : vector<16x128xf32>
    %80 = arith.divf %78, %79 : vector<16x128xf32>
    %81 = vector.extract_strided_slice %74 {offsets = [0, 128], sizes = [16, 128], strides = [1, 1]} : vector<16x512xf32> to vector<16x128xf32>
    %82 = arith.negf %81 : vector<16x128xf32>
    %83 = math.exp %82 : vector<16x128xf32>
    %cst_23 = arith.constant 1.000000e+00 : f32
    %84 = vector.broadcast %cst_23 : f32 to vector<16x128xf32>
    %85 = arith.addf %84, %83 : vector<16x128xf32>
    %86 = arith.divf %84, %85 : vector<16x128xf32>
    %87 = vector.extract_strided_slice %74 {offsets = [0, 256], sizes = [16, 128], strides = [1, 1]} : vector<16x512xf32> to vector<16x128xf32>
    %88 = math.tanh %87 : vector<16x128xf32>
    %89 = vector.extract_strided_slice %74 {offsets = [0, 384], sizes = [16, 128], strides = [1, 1]} : vector<16x512xf32> to vector<16x128xf32>
    %90 = arith.negf %89 : vector<16x128xf32>
    %91 = math.exp %90 : vector<16x128xf32>
    %cst_24 = arith.constant 1.000000e+00 : f32
    %92 = vector.broadcast %cst_24 : f32 to vector<16x128xf32>
    %93 = arith.addf %92, %91 : vector<16x128xf32>
    %94 = arith.divf %92, %93 : vector<16x128xf32>
    %95 = arith.mulf %86, %68 : vector<16x128xf32>
    %96 = arith.mulf %80, %88 : vector<16x128xf32>
    %97 = arith.addf %95, %96 : vector<16x128xf32>
    %98 = math.tanh %97 : vector<16x128xf32>
    %99 = arith.mulf %94, %98 : vector<16x128xf32>
    %100 = vector.extract_strided_slice %9 {offsets = [48, 0], sizes = [16, 512], strides = [1, 1]} : vector<128x512xf32> to vector<16x512xf32>
    %101 = arith.truncf %99 : vector<16x128xf32> to vector<16x128xbf16>
    %cst_25 = arith.constant dense<0.000000e+00> : vector<16x512xf32>
    %102 = tpu.matmul %101, %10, %cst_25 {dimension_numbers = #tpu.dot_dimension_numbers<[1], [0], [0], [1], [0, 0, 1, 1], [], []>} : vector<16x128xbf16>, vector<128x512xbf16>, vector<16x512xf32> -> vector<16x512xf32>
    %103 = arith.addf %100, %102 : vector<16x512xf32>
    %104 = vector.extract_strided_slice %103 {offsets = [0, 0], sizes = [16, 128], strides = [1, 1]} : vector<16x512xf32> to vector<16x128xf32>
    %105 = arith.negf %104 : vector<16x128xf32>
    %106 = math.exp %105 : vector<16x128xf32>
    %cst_26 = arith.constant 1.000000e+00 : f32
    %107 = vector.broadcast %cst_26 : f32 to vector<16x128xf32>
    %108 = arith.addf %107, %106 : vector<16x128xf32>
    %109 = arith.divf %107, %108 : vector<16x128xf32>
    %110 = vector.extract_strided_slice %103 {offsets = [0, 128], sizes = [16, 128], strides = [1, 1]} : vector<16x512xf32> to vector<16x128xf32>
    %111 = arith.negf %110 : vector<16x128xf32>
    %112 = math.exp %111 : vector<16x128xf32>
    %cst_27 = arith.constant 1.000000e+00 : f32
    %113 = vector.broadcast %cst_27 : f32 to vector<16x128xf32>
    %114 = arith.addf %113, %112 : vector<16x128xf32>
    %115 = arith.divf %113, %114 : vector<16x128xf32>
    %116 = vector.extract_strided_slice %103 {offsets = [0, 256], sizes = [16, 128], strides = [1, 1]} : vector<16x512xf32> to vector<16x128xf32>
    %117 = math.tanh %116 : vector<16x128xf32>
    %118 = vector.extract_strided_slice %103 {offsets = [0, 384], sizes = [16, 128], strides = [1, 1]} : vector<16x512xf32> to vector<16x128xf32>
    %119 = arith.negf %118 : vector<16x128xf32>
    %120 = math.exp %119 : vector<16x128xf32>
    %cst_28 = arith.constant 1.000000e+00 : f32
    %121 = vector.broadcast %cst_28 : f32 to vector<16x128xf32>
    %122 = arith.addf %121, %120 : vector<16x128xf32>
    %123 = arith.divf %121, %122 : vector<16x128xf32>
    %124 = arith.mulf %115, %97 : vector<16x128xf32>
    %125 = arith.mulf %109, %117 : vector<16x128xf32>
    %126 = arith.addf %124, %125 : vector<16x128xf32>
    %127 = math.tanh %126 : vector<16x128xf32>
    %128 = arith.mulf %123, %127 : vector<16x128xf32>
    %129 = vector.extract_strided_slice %9 {offsets = [64, 0], sizes = [16, 512], strides = [1, 1]} : vector<128x512xf32> to vector<16x512xf32>
    %130 = arith.truncf %128 : vector<16x128xf32> to vector<16x128xbf16>
    %cst_29 = arith.constant dense<0.000000e+00> : vector<16x512xf32>
    %131 = tpu.matmul %130, %10, %cst_29 {dimension_numbers = #tpu.dot_dimension_numbers<[1], [0], [0], [1], [0, 0, 1, 1], [], []>} : vector<16x128xbf16>, vector<128x512xbf16>, vector<16x512xf32> -> vector<16x512xf32>
    %132 = arith.addf %129, %131 : vector<16x512xf32>
    %133 = vector.extract_strided_slice %132 {offsets = [0, 0], sizes = [16, 128], strides = [1, 1]} : vector<16x512xf32> to vector<16x128xf32>
    %134 = arith.negf %133 : vector<16x128xf32>
    %135 = math.exp %134 : vector<16x128xf32>
    %cst_30 = arith.constant 1.000000e+00 : f32
    %136 = vector.broadcast %cst_30 : f32 to vector<16x128xf32>
    %137 = arith.addf %136, %135 : vector<16x128xf32>
    %138 = arith.divf %136, %137 : vector<16x128xf32>
    %139 = vector.extract_strided_slice %132 {offsets = [0, 128], sizes = [16, 128], strides = [1, 1]} : vector<16x512xf32> to vector<16x128xf32>
    %140 = arith.negf %139 : vector<16x128xf32>
    %141 = math.exp %140 : vector<16x128xf32>
    %cst_31 = arith.constant 1.000000e+00 : f32
    %142 = vector.broadcast %cst_31 : f32 to vector<16x128xf32>
    %143 = arith.addf %142, %141 : vector<16x128xf32>
    %144 = arith.divf %142, %143 : vector<16x128xf32>
    %145 = vector.extract_strided_slice %132 {offsets = [0, 256], sizes = [16, 128], strides = [1, 1]} : vector<16x512xf32> to vector<16x128xf32>
    %146 = math.tanh %145 : vector<16x128xf32>
    %147 = vector.extract_strided_slice %132 {offsets = [0, 384], sizes = [16, 128], strides = [1, 1]} : vector<16x512xf32> to vector<16x128xf32>
    %148 = arith.negf %147 : vector<16x128xf32>
    %149 = math.exp %148 : vector<16x128xf32>
    %cst_32 = arith.constant 1.000000e+00 : f32
    %150 = vector.broadcast %cst_32 : f32 to vector<16x128xf32>
    %151 = arith.addf %150, %149 : vector<16x128xf32>
    %152 = arith.divf %150, %151 : vector<16x128xf32>
    %153 = arith.mulf %144, %126 : vector<16x128xf32>
    %154 = arith.mulf %138, %146 : vector<16x128xf32>
    %155 = arith.addf %153, %154 : vector<16x128xf32>
    %156 = math.tanh %155 : vector<16x128xf32>
    %157 = arith.mulf %152, %156 : vector<16x128xf32>
    %158 = vector.extract_strided_slice %9 {offsets = [80, 0], sizes = [16, 512], strides = [1, 1]} : vector<128x512xf32> to vector<16x512xf32>
    %159 = arith.truncf %157 : vector<16x128xf32> to vector<16x128xbf16>
    %cst_33 = arith.constant dense<0.000000e+00> : vector<16x512xf32>
    %160 = tpu.matmul %159, %10, %cst_33 {dimension_numbers = #tpu.dot_dimension_numbers<[1], [0], [0], [1], [0, 0, 1, 1], [], []>} : vector<16x128xbf16>, vector<128x512xbf16>, vector<16x512xf32> -> vector<16x512xf32>
    %161 = arith.addf %158, %160 : vector<16x512xf32>
    %162 = vector.extract_strided_slice %161 {offsets = [0, 0], sizes = [16, 128], strides = [1, 1]} : vector<16x512xf32> to vector<16x128xf32>
    %163 = arith.negf %162 : vector<16x128xf32>
    %164 = math.exp %163 : vector<16x128xf32>
    %cst_34 = arith.constant 1.000000e+00 : f32
    %165 = vector.broadcast %cst_34 : f32 to vector<16x128xf32>
    %166 = arith.addf %165, %164 : vector<16x128xf32>
    %167 = arith.divf %165, %166 : vector<16x128xf32>
    %168 = vector.extract_strided_slice %161 {offsets = [0, 128], sizes = [16, 128], strides = [1, 1]} : vector<16x512xf32> to vector<16x128xf32>
    %169 = arith.negf %168 : vector<16x128xf32>
    %170 = math.exp %169 : vector<16x128xf32>
    %cst_35 = arith.constant 1.000000e+00 : f32
    %171 = vector.broadcast %cst_35 : f32 to vector<16x128xf32>
    %172 = arith.addf %171, %170 : vector<16x128xf32>
    %173 = arith.divf %171, %172 : vector<16x128xf32>
    %174 = vector.extract_strided_slice %161 {offsets = [0, 256], sizes = [16, 128], strides = [1, 1]} : vector<16x512xf32> to vector<16x128xf32>
    %175 = math.tanh %174 : vector<16x128xf32>
    %176 = vector.extract_strided_slice %161 {offsets = [0, 384], sizes = [16, 128], strides = [1, 1]} : vector<16x512xf32> to vector<16x128xf32>
    %177 = arith.negf %176 : vector<16x128xf32>
    %178 = math.exp %177 : vector<16x128xf32>
    %cst_36 = arith.constant 1.000000e+00 : f32
    %179 = vector.broadcast %cst_36 : f32 to vector<16x128xf32>
    %180 = arith.addf %179, %178 : vector<16x128xf32>
    %181 = arith.divf %179, %180 : vector<16x128xf32>
    %182 = arith.mulf %173, %155 : vector<16x128xf32>
    %183 = arith.mulf %167, %175 : vector<16x128xf32>
    %184 = arith.addf %182, %183 : vector<16x128xf32>
    %185 = math.tanh %184 : vector<16x128xf32>
    %186 = arith.mulf %181, %185 : vector<16x128xf32>
    %187 = vector.extract_strided_slice %9 {offsets = [96, 0], sizes = [16, 512], strides = [1, 1]} : vector<128x512xf32> to vector<16x512xf32>
    %188 = arith.truncf %186 : vector<16x128xf32> to vector<16x128xbf16>
    %cst_37 = arith.constant dense<0.000000e+00> : vector<16x512xf32>
    %189 = tpu.matmul %188, %10, %cst_37 {dimension_numbers = #tpu.dot_dimension_numbers<[1], [0], [0], [1], [0, 0, 1, 1], [], []>} : vector<16x128xbf16>, vector<128x512xbf16>, vector<16x512xf32> -> vector<16x512xf32>
    %190 = arith.addf %187, %189 : vector<16x512xf32>
    %191 = vector.extract_strided_slice %190 {offsets = [0, 0], sizes = [16, 128], strides = [1, 1]} : vector<16x512xf32> to vector<16x128xf32>
    %192 = arith.negf %191 : vector<16x128xf32>
    %193 = math.exp %192 : vector<16x128xf32>
    %cst_38 = arith.constant 1.000000e+00 : f32
    %194 = vector.broadcast %cst_38 : f32 to vector<16x128xf32>
    %195 = arith.addf %194, %193 : vector<16x128xf32>
    %196 = arith.divf %194, %195 : vector<16x128xf32>
    %197 = vector.extract_strided_slice %190 {offsets = [0, 128], sizes = [16, 128], strides = [1, 1]} : vector<16x512xf32> to vector<16x128xf32>
    %198 = arith.negf %197 : vector<16x128xf32>
    %199 = math.exp %198 : vector<16x128xf32>
    %cst_39 = arith.constant 1.000000e+00 : f32
    %200 = vector.broadcast %cst_39 : f32 to vector<16x128xf32>
    %201 = arith.addf %200, %199 : vector<16x128xf32>
    %202 = arith.divf %200, %201 : vector<16x128xf32>
    %203 = vector.extract_strided_slice %190 {offsets = [0, 256], sizes = [16, 128], strides = [1, 1]} : vector<16x512xf32> to vector<16x128xf32>
    %204 = math.tanh %203 : vector<16x128xf32>
    %205 = vector.extract_strided_slice %190 {offsets = [0, 384], sizes = [16, 128], strides = [1, 1]} : vector<16x512xf32> to vector<16x128xf32>
    %206 = arith.negf %205 : vector<16x128xf32>
    %207 = math.exp %206 : vector<16x128xf32>
    %cst_40 = arith.constant 1.000000e+00 : f32
    %208 = vector.broadcast %cst_40 : f32 to vector<16x128xf32>
    %209 = arith.addf %208, %207 : vector<16x128xf32>
    %210 = arith.divf %208, %209 : vector<16x128xf32>
    %211 = arith.mulf %202, %184 : vector<16x128xf32>
    %212 = arith.mulf %196, %204 : vector<16x128xf32>
    %213 = arith.addf %211, %212 : vector<16x128xf32>
    %214 = math.tanh %213 : vector<16x128xf32>
    %215 = arith.mulf %210, %214 : vector<16x128xf32>
    %216 = vector.extract_strided_slice %9 {offsets = [112, 0], sizes = [16, 512], strides = [1, 1]} : vector<128x512xf32> to vector<16x512xf32>
    %217 = arith.truncf %215 : vector<16x128xf32> to vector<16x128xbf16>
    %cst_41 = arith.constant dense<0.000000e+00> : vector<16x512xf32>
    %218 = tpu.matmul %217, %10, %cst_41 {dimension_numbers = #tpu.dot_dimension_numbers<[1], [0], [0], [1], [0, 0, 1, 1], [], []>} : vector<16x128xbf16>, vector<128x512xbf16>, vector<16x512xf32> -> vector<16x512xf32>
    %219 = arith.addf %216, %218 : vector<16x512xf32>
    %220 = vector.extract_strided_slice %219 {offsets = [0, 0], sizes = [16, 128], strides = [1, 1]} : vector<16x512xf32> to vector<16x128xf32>
    %221 = arith.negf %220 : vector<16x128xf32>
    %222 = math.exp %221 : vector<16x128xf32>
    %cst_42 = arith.constant 1.000000e+00 : f32
    %223 = vector.broadcast %cst_42 : f32 to vector<16x128xf32>
    %224 = arith.addf %223, %222 : vector<16x128xf32>
    %225 = arith.divf %223, %224 : vector<16x128xf32>
    %226 = vector.extract_strided_slice %219 {offsets = [0, 128], sizes = [16, 128], strides = [1, 1]} : vector<16x512xf32> to vector<16x128xf32>
    %227 = arith.negf %226 : vector<16x128xf32>
    %228 = math.exp %227 : vector<16x128xf32>
    %cst_43 = arith.constant 1.000000e+00 : f32
    %229 = vector.broadcast %cst_43 : f32 to vector<16x128xf32>
    %230 = arith.addf %229, %228 : vector<16x128xf32>
    %231 = arith.divf %229, %230 : vector<16x128xf32>
    %232 = vector.extract_strided_slice %219 {offsets = [0, 256], sizes = [16, 128], strides = [1, 1]} : vector<16x512xf32> to vector<16x128xf32>
    %233 = math.tanh %232 : vector<16x128xf32>
    %234 = vector.extract_strided_slice %219 {offsets = [0, 384], sizes = [16, 128], strides = [1, 1]} : vector<16x512xf32> to vector<16x128xf32>
    %235 = arith.negf %234 : vector<16x128xf32>
    %236 = math.exp %235 : vector<16x128xf32>
    %cst_44 = arith.constant 1.000000e+00 : f32
    %237 = vector.broadcast %cst_44 : f32 to vector<16x128xf32>
    %238 = arith.addf %237, %236 : vector<16x128xf32>
    %239 = arith.divf %237, %238 : vector<16x128xf32>
    %240 = arith.mulf %231, %213 : vector<16x128xf32>
    %241 = arith.mulf %225, %233 : vector<16x128xf32>
    %242 = arith.addf %240, %241 : vector<16x128xf32>
    %243 = math.tanh %242 : vector<16x128xf32>
    %244 = arith.mulf %239, %243 : vector<16x128xf32>
    %c0_45 = arith.constant 0 : index
    %c0_46 = arith.constant 0 : index
    %245 = vector.load %arg9[%c0_45, %c0_46] : memref<16x128xf32, #tpu.memory_space<vmem>>, vector<16x128xf32>
    tpu.vector_store %arg9[%c0_45, %c0_46], %244 {strides = array<i32>} : memref<16x128xf32, #tpu.memory_space<vmem>>, vector<16x128xf32>,
    %c0_47 = arith.constant 0 : index
    %c0_48 = arith.constant 0 : index
    %246 = vector.load %arg10[%c0_47, %c0_48] : memref<16x128xf32, #tpu.memory_space<vmem>>, vector<16x128xf32>
    tpu.vector_store %arg10[%c0_47, %c0_48], %242 {strides = array<i32>} : memref<16x128xf32, #tpu.memory_space<vmem>>, vector<16x128xf32>,
    %c1_i32 = arith.constant 1 : i32
    %247 = arith.cmpi eq, %arg1, %c1_i32 : i32
    %248 = arith.extui %247 : i1 to i32
    %c0_i32_49 = arith.constant 0 : i32
    %249 = arith.cmpi ne, %248, %c0_i32_49 : i32
    scf.if %249 {
      %250 = arith.truncf %244 : vector<16x128xf32> to vector<16x128xbf16>
      %c0_50 = arith.constant 0 : index
      %c0_51 = arith.constant 0 : index
      %251 = vector.load %arg6[%c0_50, %c0_51] : memref<128x128xbf16, #tpu.memory_space<vmem>>, vector<128x128xbf16>
      %cst_52 = arith.constant dense<0.000000e+00> : vector<16x128xf32>
      %252 = tpu.matmul %250, %251, %cst_52 {dimension_numbers = #tpu.dot_dimension_numbers<[1], [0], [0], [1], [0, 0, 1, 1], [], []>} : vector<16x128xbf16>, vector<128x128xbf16>, vector<16x128xf32> -> vector<16x128xf32>
      %c0_53 = arith.constant 0 : index
      %c0_54 = arith.constant 0 : index
      %253 = vector.load %arg7[%c0_53, %c0_54] : memref<1x128xf32, #tpu.memory_space<vmem>>, vector<1x128xf32>
      %254 = vector.broadcast %253 : vector<1x128xf32> to vector<16x128xf32>
      %255 = arith.addf %252, %254 : vector<16x128xf32>
      %c0_55 = arith.constant 0 : index
      %c0_56 = arith.constant 0 : index
      %256 = vector.load %arg8[%c0_55, %c0_56] : memref<16x128xf32, #tpu.memory_space<vmem>>, vector<16x128xf32>
      tpu.vector_store %arg8[%c0_55, %c0_56], %255 {strides = array<i32>} : memref<16x128xf32, #tpu.memory_space<vmem>>, vector<16x128xf32>,
    } else {
    }
    return
  }
  func.func @transform_0(%arg0: i32, %arg1: i32) -> (i32, i32, i32) {
    %c0_i32 = arith.constant 0 : i32
    %c0_i32_0 = arith.constant 0 : i32
    return %arg1, %arg0, %c0_i32 : i32, i32, i32
  }
  func.func @transform_1(%arg0: i32, %arg1: i32) -> (i32, i32) {
    %c0_i32 = arith.constant 0 : i32
    %c0_i32_0 = arith.constant 0 : i32
    %c0_i32_1 = arith.constant 0 : i32
    return %c0_i32, %c0_i32_0 : i32, i32
  }
  func.func @transform_2(%arg0: i32, %arg1: i32) -> (i32, i32) {
    %c0_i32 = arith.constant 0 : i32
    %c0_i32_0 = arith.constant 0 : i32
    %c0_i32_1 = arith.constant 0 : i32
    return %c0_i32, %c0_i32_0 : i32, i32
  }
  func.func @transform_3(%arg0: i32, %arg1: i32) -> (i32, i32) {
    %c0_i32 = arith.constant 0 : i32
    %c0_i32_0 = arith.constant 0 : i32
    %c0_i32_1 = arith.constant 0 : i32
    return %c0_i32, %c0_i32_0 : i32, i32
  }
  func.func @transform_4(%arg0: i32, %arg1: i32) -> (i32, i32) {
    %c0_i32 = arith.constant 0 : i32
    %c0_i32_0 = arith.constant 0 : i32
    %c0_i32_1 = arith.constant 0 : i32
    return %c0_i32, %c0_i32_0 : i32, i32
  }
  func.func @transform_5(%arg0: i32, %arg1: i32) -> (i32, i32) {
    %c0_i32 = arith.constant 0 : i32
    %c0_i32_0 = arith.constant 0 : i32
    %c0_i32_1 = arith.constant 0 : i32
    return %c0_i32, %c0_i32_0 : i32, i32
  }
  func.func @transform_6(%arg0: i32, %arg1: i32) -> (i32, i32) {
    %c0_i32 = arith.constant 0 : i32
    %c0_i32_0 = arith.constant 0 : i32
    return %arg0, %c0_i32 : i32, i32
  }
}

</mosaic_0001>

<bundles_post_ra>
// kernel: lstm_model_forward.1
= control target key start
LH: loop header
LB: loop body
LE: loop exit
PB: predicated region body
PF: predicated region fallthrough
CT: control target
= control target key end

     0   :  { %s2993_s21 = smov 0   ;;  %s2995_s22 = smov 0   ;;  %s4098_s0 = inlined_call_operand.vmem [shape: bf16[16,16,128], index: 0, kind: input, shape index: {}]   ;;  %s4099_s1 = inlined_call_operand.vmem [shape: bf16[128,512], index: 1, kind: input, shape index: {}]   ;;  %s4100_s2 = inlined_call_operand.vmem [shape: bf16[128,512], index: 2, kind: input, shape index: {}]   ;;  %s4101_s3 = inlined_call_operand.vmem [shape: f32[1,512], index: 3, kind: input, shape index: {}]   ;;  %s4102_s4 = inlined_call_operand.vmem [shape: bf16[128,128], index: 4, kind: input, shape index: {}]   ;;  %s4103_s5 = inlined_call_operand.vmem [shape: f32[1,128], index: 5, kind: input, shape index: {}]   ;;  %s4104_s6 = inlined_call_operand.vmem [shape: f32[16,128], index: 6, kind: output, shape index: {}]  }
   0x1   :  { %s2997_s23 = smov 0  }
   0x2 LB: > { %s25_s24 = sadd.s32 1, %s2948_s22  ;;  %p2333_p0 = scmp.ge.s32.totalorder %s2952_s23, 1  ;;  %s2952_s23 = sphi %s2997_s23, %s16_s23   ;;  %s2948_s22 = sphi %s2995_s22, %s4211_s22   ;;  %s2944_s21 = sphi %s2993_s21, %s4210_s21  }
   0x3   : > { %p26_p1 = scmp.ge.s32.totalorder %s25_s24, 2  ;;  %p233_p2 = scmp.lt.s32.totalorder %s2952_s23, 3 }
   0x5   : > { %s4213_s24 = smov (%p26_p1, %s25_s24), 0  ;;  %p234_p3 = pnand %p2333_p0, %p233_p2 }
   0x7   : > { %237 = sbr.rel (%p234_p3) target bundleno = 2392 (0x958), region = 44 }
   0xc   : > { %s2334_s25 = sshll.u32 %s2944_s21, 3  ;;  %p2337_p5 = scmp.ne.s32.totalorder %s2944_s21, 0 }
   0xd   : > { %p270_p4 = scmp.lt.s32.totalorder %s2334_s25, 15 }
   0xe   : > { %290 = sbr.rel (%p2337_p5) target bundleno = 22 (0x16), region = 48 }
   0xf   : > { %s4215_s25 = smov (!%p270_p4, %s2334_s25), 15 }
  0x10   : > { %s2472_s26 = sshll.u32 %s4215_s25, 3 }
  0x11   : > { %s3017_s29 = scalar_lea.vmem %s4098_s0, %s2472_s26 }
  0x13   : > { %v2954_v0 = vmov 0.0  }
  0x14   : > { %291 = vst [vmem:[#allocation2] sm:$0xff] %v2954_v0  ;;  %292 = vst [vmem:[#allocation2 + $0x8] sm:$0xff] %v2954_v0 }
  0x15   : > { %293 = vst [vmem:[#allocation3 + $0x8] sm:$0xff] %v2954_v0  ;;  %294 = vst [vmem:[#allocation3] sm:$0xff] %v2954_v0 }
  0x16 PF: > { %v2530_v1 = vld [vmem:[%s4099_s1 + $0xe4] ss:$16 sps:$4 sm:$0xff]   ;;  %v2532_v2 = vld [vmem:[%s4099_s1 + $0xec] ss:$16 sps:$4 sm:$0xff]   ;;  %v4105_v3 = vmov 0   ;;  %p2458_p6 = scmp.ne.s32.totalorder %s2944_s21, 1 }
  0x17   : > { %605 = vmatprep.mubr.bf16.mxu0 %v4105_v3  ;;  %718 = vmatprep.mubr.bf16.mxu1 %v4105_v3  ;;  %v2534_v4 = vld [vmem:[%s4099_s1 + $0xe0] ss:$16 sps:$4 sm:$0xff]   ;;  %v2535_v5 = vld [vmem:[%s4099_s1 + $0xe8] ss:$16 sps:$4 sm:$0xff]   ;;  %v2536_v6 = vld [vmem:[%s4099_s1 + $0xc4] ss:$16 sps:$4 sm:$0xff]  }
  0x18   : > { %573 = vmatprep.subr.bf16.mxu0 %v2530_v1  ;;  %686 = vmatprep.subr.bf16.mxu1 %v2532_v2  ;;  %v2538_v7 = vld [vmem:[%s4099_s1 + $0xcc] ss:$16 sps:$4 sm:$0xff]   ;;  %v2540_v8 = vld [vmem:[%s4099_s1 + $0xc0] ss:$16 sps:$4 sm:$0xff]   ;;  %v2541_v9 = vld [vmem:[%s4099_s1 + $0xc8] ss:$16 sps:$4 sm:$0xff]  }
  0x19   : > { %574 = vmatpush1.bf16.msra.mxu0 %v2534_v4  ;;  %687 = vmatpush1.bf16.msra.mxu1 %v2535_v5  ;;  %v2542_v10 = vld [vmem:[%s4099_s1 + $0xa4] ss:$16 sps:$4 sm:$0xff]   ;;  %v2544_v11 = vld [vmem:[%s4099_s1 + $0xac] ss:$16 sps:$4 sm:$0xff]   ;;  %v2546_v12 = vld [vmem:[%s4099_s1 + $0xa0] ss:$16 sps:$4 sm:$0xff]  }
  0x1a   : > { %575 = vmatprep.subr.bf16.mxu0 %v2536_v6  ;;  %688 = vmatprep.subr.bf16.mxu1 %v2538_v7  ;;  %v2547_v13 = vld [vmem:[%s4099_s1 + $0xa8] ss:$16 sps:$4 sm:$0xff]   ;;  %v2548_v14 = vld [vmem:[%s4099_s1 + $0x84] ss:$16 sps:$4 sm:$0xff]   ;;  %v2550_v15 = vld [vmem:[%s4099_s1 + $0x8c] ss:$16 sps:$4 sm:$0xff]  }
  0x1b   : > { %v2552_v16 = vld [vmem:[%s4099_s1 + $0x80] ss:$16 sps:$4 sm:$0xff]   ;;  %v2553_v17 = vld [vmem:[%s4099_s1 + $0x88] ss:$16 sps:$4 sm:$0xff]   ;;  %v2554_v18 = vld [vmem:[%s4099_s1 + $0x64] ss:$16 sps:$4 sm:$0xff]  }
  0x1c   : > { %v2556_v19 = vld [vmem:[%s4099_s1 + $0x6c] ss:$16 sps:$4 sm:$0xff]   ;;  %v2558_v20 = vld [vmem:[%s4099_s1 + $0x60] ss:$16 sps:$4 sm:$0xff]   ;;  %v2559_v21 = vld [vmem:[%s4099_s1 + $0x68] ss:$16 sps:$4 sm:$0xff]  }
  0x1d   : > { %576 = vmatpush1.bf16.msra.mxu0 %v2540_v8  ;;  %689 = vmatpush1.bf16.msra.mxu1 %v2541_v9  ;;  %v2560_v22 = vld [vmem:[%s4099_s1 + $0x44] ss:$16 sps:$4 sm:$0xff]   ;;  %v2562_v23 = vld [vmem:[%s4099_s1 + $0x4c] ss:$16 sps:$4 sm:$0xff]   ;;  %v2564_v24 = vld [vmem:[%s4099_s1 + $0x40] ss:$16 sps:$4 sm:$0xff]  }
  0x1e   : > { %577 = vmatprep.subr.bf16.mxu0 %v2542_v10  ;;  %690 = vmatprep.subr.bf16.mxu1 %v2544_v11  ;;  %v2565_v25 = vld [vmem:[%s4099_s1 + $0x48] ss:$16 sps:$4 sm:$0xff]   ;;  %v2566_v26 = vld [vmem:[%s4099_s1 + $0x24] ss:$16 sps:$4 sm:$0xff]   ;;  %v2568_v27 = vld [vmem:[%s4099_s1 + $0x2c] ss:$16 sps:$4 sm:$0xff]  }
  0x1f   : > { %v2570_v28 = vld [vmem:[%s4099_s1 + $0x20] ss:$16 sps:$4 sm:$0xff]   ;;  %v2571_v29 = vld [vmem:[%s4099_s1 + $0x28] ss:$16 sps:$4 sm:$0xff]   ;;  %v2572_v30 = vld [vmem:[%s4099_s1 + $0x4] ss:$16 sps:$4 sm:$0xff]  }
  0x20   : > { %v2574_v31 = vld [vmem:[%s4099_s1 + $0xc] ss:$16 sps:$4 sm:$0xff]   ;;  %v2576_v32 = vld [vmem:[%s4099_s1] ss:$16 sps:$4 sm:$0xff]   ;;  %v2577_v33 = vld [vmem:[%s4099_s1 + $0x8] ss:$16 sps:$4 sm:$0xff]  }
  0x21   : > { %578 = vmatpush1.bf16.msra.mxu0 %v2546_v12  ;;  %691 = vmatpush1.bf16.msra.mxu1 %v2547_v13  ;;  %v3121_v34 = vld [vmem:[%s4100_s2 + $0xe4] ss:$16 sps:$4 sm:$0xff]   ;;  %v3126_v35 = vld [vmem:[%s4100_s2 + $0xec] ss:$16 sps:$4 sm:$0xff]   ;;  %v3132_v37 = vld [vmem:[%s4100_s2 + $0xe0] ss:$16 sps:$4 sm:$0xff]  }
  0x22   : > { %579 = vmatprep.subr.bf16.mxu0 %v2548_v14  ;;  %692 = vmatprep.subr.bf16.mxu1 %v2550_v15  ;;  %v2578_v36 = vld [vmem:[%s3017_s29] sm:$0xff]   ;;  %v3144_v39 = vld [vmem:[%s4100_s2 + $0xe8] ss:$16 sps:$4 sm:$0xff]   ;;  %v3149_v40 = vld [vmem:[%s4100_s2 + $0xcc] ss:$16 sps:$4 sm:$0xff]   ;;  %v345_v14 = vlaneseq }
  0x23   : > { %v3138_v38 = vld [vmem:[%s4100_s2 + $0xc4] ss:$16 sps:$4 sm:$0xff]   ;;  %v3156_v41 = vld [vmem:[%s4100_s2 + $0xc0] ss:$16 sps:$4 sm:$0xff]   ;;  %v3169_v43 = vld [vmem:[%s4100_s2 + $0xc8] ss:$16 sps:$4 sm:$0xff]  }
  0x24   : > { %v3163_v42 = vld [vmem:[%s4100_s2 + $0xa4] ss:$16 sps:$4 sm:$0xff]   ;;  %v2582_v44 = vld [vmem:[%s3017_s29 + $0x8] sm:$0xff]   ;;  %v3177_v45 = vld [vmem:[%s4100_s2 + $0xa0] ss:$16 sps:$4 sm:$0xff]   ;;  %v346_v15 = vshrl.u32 %v345_v14, 7 }
  0x25   : > { %580 = vmatpush1.bf16.msra.mxu0 %v2552_v16  ;;  %693 = vmatpush1.bf16.msra.mxu1 %v2553_v17  ;;  %v3182_v46 = vld [vmem:[%s4100_s2 + $0x84] ss:$16 sps:$4 sm:$0xff]   ;;  %v3188_v47 = vld [vmem:[%s4100_s2 + $0xac] ss:$16 sps:$4 sm:$0xff]   ;;  %v3194_v48 = vld [vmem:[%s4100_s2 + $0xa8] ss:$16 sps:$4 sm:$0xff]  }
  0x26   : > { %581 = vmatprep.subr.bf16.mxu0 %v2554_v18  ;;  %694 = vmatprep.subr.bf16.mxu1 %v2556_v19  ;;  %v3199_v49 = vld [vmem:[%s4100_s2 + $0x8c] ss:$16 sps:$4 sm:$0xff]   ;;  %v3207_v50 = vld [vmem:[%s4100_s2 + $0x80] ss:$16 sps:$4 sm:$0xff]   ;;  %v3212_v51 = vld [vmem:[%s4100_s2 + $0x64] ss:$16 sps:$4 sm:$0xff]  }
  0x27   : > { %v3220_v52 = vld [vmem:[%s4100_s2 + $0x88] ss:$16 sps:$4 sm:$0xff]   ;;  %v2586_v53 = vld [vmem:[%s3017_s29 + $0x10] sm:$0xff]   ;;  %v3233_v55 = vld [vmem:[%s4100_s2 + $0x6c] ss:$16 sps:$4 sm:$0xff]  }
  0x28   : > { %v3227_v54 = vld [vmem:[%s4100_s2 + $0x60] ss:$16 sps:$4 sm:$0xff]   ;;  %v3239_v56 = vld [vmem:[%s4100_s2 + $0x44] ss:$16 sps:$4 sm:$0xff]   ;;  %v3245_v57 = vld [vmem:[%s4100_s2 + $0x68] ss:$16 sps:$4 sm:$0xff]  }
  0x29   : > { %582 = vmatpush1.bf16.msra.mxu0 %v2558_v20  ;;  %695 = vmatpush1.bf16.msra.mxu1 %v2559_v21  ;;  %v3250_v58 = vld [vmem:[%s4100_s2 + $0x4c] ss:$16 sps:$4 sm:$0xff]   ;;  %v3258_v59 = vld [vmem:[%s4100_s2 + $0x40] ss:$16 sps:$4 sm:$0xff]   ;;  %v3265_v60 = vld [vmem:[%s4100_s2 + $0x24] ss:$16 sps:$4 sm:$0xff]  }
  0x2a   : > { %583 = vmatprep.subr.bf16.mxu0 %v2560_v22  ;;  %696 = vmatprep.subr.bf16.mxu1 %v2562_v23  ;;  %v3271_v61 = vld [vmem:[%s4100_s2 + $0x48] ss:$16 sps:$4 sm:$0xff]   ;;  %v3279_v63 = vld [vmem:[%s4100_s2 + $0x20] ss:$16 sps:$4 sm:$0xff]   ;;  %v3284_v0 = vld [vmem:[%s4100_s2 + $0x2c] ss:$16 sps:$4 sm:$0xff]  }
  0x2b   : > { %v2593_v62 = vld [vmem:[%s3017_s29 + $0x18] sm:$0xff]   ;;  %v3291_v1 = vld [vmem:[%s4100_s2 + $0x4] ss:$16 sps:$4 sm:$0xff]   ;;  %v3310_v5 = vld [vmem:[%s4100_s2] ss:$16 sps:$4 sm:$0xff]   ;;  %v347_v20 = vsub.s32 0, %v346_v15 }
  0x2c   : > { %v3296_v2 = vld [vmem:[%s4100_s2 + $0x28] ss:$16 sps:$4 sm:$0xff]   ;;  %v3301_v4 = vld [vmem:[%s4100_s2 + $0xc] ss:$16 sps:$4 sm:$0xff]   ;;  %v2600_v7 = vld [vmem:[%s3017_s29 + $0x20] sm:$0xff]   ;;  %v355_v21 = vsub.s32 2, %v346_v15 }
  0x2d   : > { %584 = vmatpush1.bf16.msra.mxu0 %v2564_v24  ;;  %697 = vmatpush1.bf16.msra.mxu1 %v2565_v25  ;;  %v3317_v6 = vld [vmem:[%s4100_s2 + $0x8] ss:$16 sps:$4 sm:$0xff]   ;;  %v2614_v9 = vld [vmem:[%s3017_s29 + $0x30] sm:$0xff]   ;;  %v831_v11 = vld [vmem:[#allocation2] sm:$0xff]  ;;  %v351_v25 = vsub.s32 1, %v346_v15 }
  0x2e   : > { %585 = vmatprep.subr.bf16.mxu0 %v2566_v26  ;;  %698 = vmatprep.subr.bf16.mxu1 %v2568_v27  ;;  %v2607_v8 = vld [vmem:[%s3017_s29 + $0x28] sm:$0xff]   ;;  %v2624_v10 = vld [vmem:[%s3017_s29 + $0x38] sm:$0xff]   ;;  %v343_v22 = vld [vmem:[%s4101_s3] sm:$0xf]  ;;  %v359_v26 = vsub.s32 3, %v346_v15 }
  0x2f   : > { %v832_v12 = vld [vmem:[#allocation2 + $0x8] sm:$0xff] }
  0x30   : > { %v835_v13 = vpack.c.bf16 %v832_v12, %v831_v11 }
  0x31   : > { %586 = vmatpush1.bf16.msra.mxu0 %v2570_v28  ;;  %699 = vmatpush1.bf16.msra.mxu1 %v2571_v29  ;;  %v3389_v29 = vrot.slane %v343_v22, %v347_v20 }
  0x32   : > { %587 = vmatprep.subr.bf16.mxu0 %v2572_v30  ;;  %700 = vmatprep.subr.bf16.mxu1 %v2574_v31  ;;  %v3391_v30 = vrot.slane %v343_v22, %v355_v21 }
  0x35   : > { %588 = vmatpush1.bf16.msra.mxu0 %v2576_v32  ;;  %701 = vmatpush1.bf16.msra.mxu1 %v2577_v33  ;;  %v3393_v33 = vrot.slane %v343_v22, %v351_v25 }
  0x36   : > { %996 = vmatprep.subr.bf16.mxu0 %v3121_v34  ;;  %1039 = vmatprep.subr.bf16.mxu1 %v3126_v35 }
  0x38   : > { %606 = vmatmul.mubr.bf16.vlgmr.msra.gmra.mxu0 %v2578_v36  ;;  %719 = vmatmul.mubr.bf16.vlgmr.msra.gmra.mxu1 %v2578_v36  ;;  %v3395_v36 = vrot.slane %v343_v22, %v359_v26 }
  0x39   : > { %997 = vmatpush1.bf16.msra.mxu0 %v3132_v37  ;;  %615 = vmatprep.mubr.bf16.mxu0 %v4105_v3 }
  0x3a   : > { %728 = vmatprep.mubr.bf16.mxu1 %v4105_v3  ;;  %998 = vmatprep.subr.bf16.mxu0 %v3138_v38 }
  0x3b   : > { %1040 = vmatpush1.bf16.msra.mxu1 %v3144_v39 }
  0x3c   : > { %1041 = vmatprep.subr.bf16.mxu1 %v3149_v40 }
  0x3d   : > { %999 = vmatpush1.bf16.msra.mxu0 %v3156_v41 }
  0x3e   : > { %1000 = vmatprep.subr.bf16.mxu0 %v3163_v42 }
  0x3f   : > { %1042 = vmatpush1.bf16.msra.mxu1 %v3169_v43 }
  0x40   : > { %616 = vmatmul.mubr.bf16.gmra.mxu0 %v2582_v44  ;;  %729 = vmatmul.mubr.bf16.gmra.mxu1 %v2582_v44 }
  0x41   : > { %625 = vmatprep.mubr.bf16.mxu0 %v4105_v3  ;;  %738 = vmatprep.mubr.bf16.mxu1 %v4105_v3 }
  0x42   : > { %1001 = vmatpush1.bf16.msra.mxu0 %v3177_v45  ;;  %1043 = vmatprep.subr.bf16.mxu1 %v3188_v47 }
  0x43   : > { %1002 = vmatprep.subr.bf16.mxu0 %v3182_v46  ;;  %1044 = vmatpush1.bf16.msra.mxu1 %v3194_v48 }
  0x44   : > { %1045 = vmatprep.subr.bf16.mxu1 %v3199_v49 }
  0x46   : > { %1003 = vmatpush1.bf16.msra.mxu0 %v3207_v50 }
  0x47   : > { %1004 = vmatprep.subr.bf16.mxu0 %v3212_v51  ;;  %1046 = vmatpush1.bf16.msra.mxu1 %v3220_v52 }
  0x48   : > { %626 = vmatmul.mubr.bf16.gmra.mxu0 %v2586_v53  ;;  %739 = vmatmul.mubr.bf16.gmra.mxu1 %v2586_v53 }
  0x49   : > { %635 = vmatprep.mubr.bf16.mxu0 %v4105_v3  ;;  %748 = vmatprep.mubr.bf16.mxu1 %v4105_v3 }
  0x4a   : > { %1005 = vmatpush1.bf16.msra.mxu0 %v3227_v54  ;;  %1047 = vmatprep.subr.bf16.mxu1 %v3233_v55 }
  0x4b   : > { %1006 = vmatprep.subr.bf16.mxu0 %v3239_v56  ;;  %1048 = vmatpush1.bf16.msra.mxu1 %v3245_v57 }
  0x4c   : > { %1049 = vmatprep.subr.bf16.mxu1 %v3250_v58 }
  0x4e   : > { %1007 = vmatpush1.bf16.msra.mxu0 %v3258_v59 }
  0x4f   : > { %1008 = vmatprep.subr.bf16.mxu0 %v3265_v60  ;;  %1050 = vmatpush1.bf16.msra.mxu1 %v3271_v61 }
  0x50   : > { %636 = vmatmul.mubr.bf16.gmra.mxu0 %v2593_v62  ;;  %749 = vmatmul.mubr.bf16.gmra.mxu1 %v2593_v62 }
  0x51   : > { %645 = vmatprep.mubr.bf16.mxu0 %v4105_v3  ;;  %758 = vmatprep.mubr.bf16.mxu1 %v4105_v3 }
  0x52   : > { %1009 = vmatpush1.bf16.msra.mxu0 %v3279_v63  ;;  %1051 = vmatprep.subr.bf16.mxu1 %v3284_v0 }
  0x53   : > { %1010 = vmatprep.subr.bf16.mxu0 %v3291_v1  ;;  %1052 = vmatpush1.bf16.msra.mxu1 %v3296_v2 }
  0x54   : > { %1053 = vmatprep.subr.bf16.mxu1 %v3301_v4 }
  0x56   : > { %1011 = vmatpush1.bf16.msra.mxu0 %v3310_v5 }
  0x57   : > { %1054 = vmatpush1.bf16.msra.mxu1 %v3317_v6  ;;  %1139 = vmatprep.subr.bf16.mxu0 %v3121_v34 }
  0x58   : > { %646 = vmatmul.mubr.bf16.gmra.mxu0 %v2600_v7  ;;  %759 = vmatmul.mubr.bf16.gmra.mxu1 %v2600_v7 }
  0x59   : > { %655 = vmatprep.mubr.bf16.mxu0 %v4105_v3  ;;  %768 = vmatprep.mubr.bf16.mxu1 %v4105_v3 }
  0x5a   : > { %1182 = vmatprep.subr.bf16.mxu1 %v3126_v35 }
  0x60   : > { %656 = vmatmul.mubr.bf16.gmra.mxu0 %v2607_v8  ;;  %769 = vmatmul.mubr.bf16.gmra.mxu1 %v2607_v8 }
  0x61   : > { %665 = vmatprep.mubr.bf16.mxu0 %v4105_v3  ;;  %778 = vmatprep.mubr.bf16.mxu1 %v4105_v3 }
  0x68   : > { %666 = vmatmul.mubr.bf16.gmra.mxu0 %v2614_v9  ;;  %779 = vmatmul.mubr.bf16.gmra.mxu1 %v2614_v9 }
  0x69   : > { %675 = vmatprep.mubr.bf16.mxu0 %v4105_v3  ;;  %788 = vmatprep.mubr.bf16.mxu1 %v4105_v3 }
  0x70   : > { %676 = vmatmul.mubr.bf16.gmra.mxu0 %v2624_v10  ;;  %789 = vmatmul.mubr.bf16.gmra.mxu1 %v2624_v10 }
  0x71   : > { %1028 = vmatprep.mubr.bf16.mxu0 %v4105_v3  ;;  %1071 = vmatprep.mubr.bf16.mxu1 %v4105_v3 }
  0x78   : > { %1029 = vmatmul.mubr.bf16.vlgmr.msra.gmra.mxu0 %v835_v13  ;;  %1072 = vmatmul.mubr.bf16.vlgmr.msra.gmra.mxu1 %v835_v13 }
  0x79   : > { %1140 = vmatpush1.bf16.msra.mxu0 %v3132_v37  ;;  %1183 = vmatpush1.bf16.msra.mxu1 %v3144_v39 }
  0x7a   : > { %1141 = vmatprep.subr.bf16.mxu0 %v3138_v38  ;;  %1184 = vmatprep.subr.bf16.mxu1 %v3149_v40 }
  0x7b   : > { %1171 = vmatprep.mubr.bf16.mxu0 %v4105_v3  ;;  %1214 = vmatprep.mubr.bf16.mxu1 %v4105_v3 }
  0x7d   : > { %1142 = vmatpush1.bf16.msra.mxu0 %v3156_v41  ;;  %1185 = vmatpush1.bf16.msra.mxu1 %v3169_v43 }
  0x7e   : > { %1143 = vmatprep.subr.bf16.mxu0 %v3163_v42  ;;  %1186 = vmatprep.subr.bf16.mxu1 %v3188_v47 }
  0x81   : > { %1144 = vmatpush1.bf16.msra.mxu0 %v3177_v45  ;;  %1187 = vmatpush1.bf16.msra.mxu1 %v3194_v48 }
  0x82   : > { %1145 = vmatprep.subr.bf16.mxu0 %v3182_v46  ;;  %1188 = vmatprep.subr.bf16.mxu1 %v3199_v49 }
  0x85   : > { %1146 = vmatpush1.bf16.msra.mxu0 %v3207_v50  ;;  %1189 = vmatpush1.bf16.msra.mxu1 %v3220_v52 }
  0x86   : > { %1147 = vmatprep.subr.bf16.mxu0 %v3212_v51  ;;  %1190 = vmatprep.subr.bf16.mxu1 %v3233_v55 }
  0x89   : > { %1148 = vmatpush1.bf16.msra.mxu0 %v3227_v54  ;;  %1191 = vmatpush1.bf16.msra.mxu1 %v3245_v57 }
  0x8a   : > { %1149 = vmatprep.subr.bf16.mxu0 %v3239_v56  ;;  %1192 = vmatprep.subr.bf16.mxu1 %v3250_v58 }
  0x8d   : > { %1150 = vmatpush1.bf16.msra.mxu0 %v3258_v59  ;;  %1193 = vmatpush1.bf16.msra.mxu1 %v3271_v61 }
  0x8e   : > { %1151 = vmatprep.subr.bf16.mxu0 %v3265_v60  ;;  %1194 = vmatprep.subr.bf16.mxu1 %v3284_v0 }
  0x91   : > { %1152 = vmatpush1.bf16.msra.mxu0 %v3279_v63  ;;  %1195 = vmatpush1.bf16.msra.mxu1 %v3296_v2 }
  0x92   : > { %1153 = vmatprep.subr.bf16.mxu0 %v3291_v1  ;;  %1196 = vmatprep.subr.bf16.mxu1 %v3301_v4 }
  0x95   : > { %1154 = vmatpush1.bf16.msra.mxu0 %v3310_v5  ;;  %1197 = vmatpush1.bf16.msra.mxu1 %v3317_v6 }
  0x96   : > { %1282 = vmatprep.subr.bf16.mxu0 %v3121_v34  ;;  %1325 = vmatprep.subr.bf16.mxu1 %v3126_v35 }
  0xf8   : > { %v3370_v16 = vpop.f32.mrf.mxu0  ;;  %v3372_v17 = vpop.f32.mrf.mxu1 }
  0xfa   : > { %v3374_v18 = vpop.f32.mrf.mxu0  ;;  %v3376_v19 = vpop.f32.mrf.mxu1 }
  0xfc   : > { %v3381_v23 = vpop.f32.mrf.mxu0  ;;  %v3383_v24 = vpop.f32.mrf.mxu1 }
  0xfe   : > { %v3385_v27 = vpop.f32.mrf.mxu0  ;;  %v3387_v28 = vpop.f32.mrf.mxu1 }
 0x100   : > { %v617_v31 = vpop.f32.mrf.mxu0  ;;  %v730_v32 = vpop.f32.mrf.mxu1 }
 0x101   : > { %v3398_v44 = vadd.f32 %v617_v31, %v3389_v29  ;;  %v3401_v53 = vadd.f32 %v730_v32, %v3391_v30 }
 0x102   : > { %v619_v62 = vpop.f32.mrf.mxu0  ;;  %v732_v7 = vpop.f32.mrf.mxu1 }
 0x103   : > { %4107 = vst [vmem:[#allocation4_spill] sm:$0xff] %v3401_v53  ;;  %v3404_v8 = vadd.f32 %v619_v62, %v3393_v33  ;;  %v3407_v9 = vadd.f32 %v732_v7, %v3395_v36 }
 0x104   : > { %v621_v10 = vpop.f32.mrf.mxu0  ;;  %v734_v11 = vpop.f32.mrf.mxu1 }
 0x105   : > { %v3410_v12 = vadd.f32 %v621_v10, %v3389_v29  ;;  %v3413_v13 = vadd.f32 %v734_v11, %v3391_v30 }
 0x106   : > { %v623_v14 = vpop.f32.mrf.mxu0  ;;  %v736_v15 = vpop.f32.mrf.mxu1 }
 0x107   : > { %4108 = vst [vmem:[#allocation5_spill] sm:$0xff] %v3413_v13  ;;  %v3416_v20 = vadd.f32 %v623_v14, %v3393_v33  ;;  %v3419_v21 = vadd.f32 %v736_v15, %v3395_v36 }
 0x108   : > { %v627_v22 = vpop.f32.mrf.mxu0  ;;  %v740_v25 = vpop.f32.mrf.mxu1 }
 0x109   : > { %4109 = vst [vmem:[#allocation6_spill] sm:$0xff] %v3419_v21  ;;  %v3422_v26 = vadd.f32 %v627_v22, %v3389_v29  ;;  %v3425_v31 = vadd.f32 %v740_v25, %v3391_v30 }
 0x10a   : > { %v629_v32 = vpop.f32.mrf.mxu0  ;;  %v742_v62 = vpop.f32.mrf.mxu1 }
 0x10b   : > { %4110 = vst [vmem:[#allocation7_spill] sm:$0xff] %v3422_v26  ;;  %4111 = vst [vmem:[#allocation8_spill] sm:$0xff] %v3425_v31  ;;  %v3428_v7 = vadd.f32 %v629_v32, %v3393_v33  ;;  %v3431_v10 = vadd.f32 %v742_v62, %v3395_v36 }
 0x10c   : > { %v631_v11 = vpop.f32.mrf.mxu0  ;;  %v744_v14 = vpop.f32.mrf.mxu1 }
 0x10d   : > { %4112 = vst [vmem:[#allocation9_spill] sm:$0xff] %v3428_v7  ;;  %4113 = vst [vmem:[#allocation10_spill] sm:$0xff] %v3431_v10  ;;  %v3434_v15 = vadd.f32 %v631_v11, %v3389_v29  ;;  %v3437_v3 = vadd.f32 %v744_v14, %v3391_v30 }
 0x10e   : > { %v633_v22 = vpop.f32.mrf.mxu0  ;;  %v746_v26 = vpop.f32.mrf.mxu1 }
 0x10f   : > { %4114 = vst [vmem:[#allocation11_spill] sm:$0xff] %v3434_v15  ;;  %4115 = vst [vmem:[#allocation12_spill] sm:$0xff] %v3437_v3  ;;  %v3440_v25 = vadd.f32 %v633_v22, %v3393_v33  ;;  %v3443_v31 = vadd.f32 %v746_v26, %v3395_v36 }
 0x110   : > { %v637_v32 = vpop.f32.mrf.mxu0  ;;  %v750_v7 = vpop.f32.mrf.mxu1 }
 0x111   : > { %4116 = vst [vmem:[#allocation13_spill] sm:$0xff] %v3440_v25  ;;  %4117 = vst [vmem:[#allocation14_spill] sm:$0xff] %v3443_v31  ;;  %v3446_v62 = vadd.f32 %v637_v32, %v3389_v29  ;;  %v3449_v10 = vadd.f32 %v750_v7, %v3391_v30 }
 0x112   : > { %v639_v11 = vpop.f32.mrf.mxu0  ;;  %v752_v15 = vpop.f32.mrf.mxu1 }
 0x113   : > { %4118 = vst [vmem:[#allocation15_spill] sm:$0xff] %v3446_v62  ;;  %4119 = vst [vmem:[#allocation16_spill] sm:$0xff] %v3449_v10  ;;  %v3452_v14 = vadd.f32 %v639_v11, %v3393_v33  ;;  %v3455_v3 = vadd.f32 %v752_v15, %v3395_v36 }
 0x114   : > { %v641_v22 = vpop.f32.mrf.mxu0  ;;  %v754_v25 = vpop.f32.mrf.mxu1 }
 0x115   : > { %4120 = vst [vmem:[#allocation17_spill] sm:$0xff] %v3452_v14  ;;  %4121 = vst [vmem:[#allocation18_spill] sm:$0xff] %v3455_v3  ;;  %v3458_v26 = vadd.f32 %v641_v22, %v3389_v29  ;;  %v3461_v31 = vadd.f32 %v754_v25, %v3391_v30 }
 0x116   : > { %v643_v32 = vpop.f32.mrf.mxu0  ;;  %v756_v62 = vpop.f32.mrf.mxu1 }
 0x117   : > { %4122 = vst [vmem:[#allocation19_spill] sm:$0xff] %v3458_v26  ;;  %4123 = vst [vmem:[#allocation20_spill] sm:$0xff] %v3461_v31  ;;  %v3464_v7 = vadd.f32 %v643_v32, %v3393_v33  ;;  %v3467_v10 = vadd.f32 %v756_v62, %v3395_v36 }
 0x118   : > { %v647_v11 = vpop.f32.mrf.mxu0  ;;  %v760_v14 = vpop.f32.mrf.mxu1 }
 0x119   : > { %4124 = vst [vmem:[#allocation21_spill] sm:$0xff] %v3464_v7  ;;  %4125 = vst [vmem:[#allocation22_spill] sm:$0xff] %v3467_v10  ;;  %v3470_v15 = vadd.f32 %v647_v11, %v3389_v29  ;;  %v3473_v3 = vadd.f32 %v760_v14, %v3391_v30 }
 0x11a   : > { %v649_v22 = vpop.f32.mrf.mxu0  ;;  %v762_v26 = vpop.f32.mrf.mxu1 }
 0x11b   : > { %4126 = vst [vmem:[#allocation23_spill] sm:$0xff] %v3470_v15  ;;  %4127 = vst [vmem:[#allocation24_spill] sm:$0xff] %v3473_v3  ;;  %v3476_v25 = vadd.f32 %v649_v22, %v3393_v33  ;;  %v3479_v31 = vadd.f32 %v762_v26, %v3395_v36 }
 0x11c   : > { %v651_v32 = vpop.f32.mrf.mxu0  ;;  %v764_v7 = vpop.f32.mrf.mxu1 }
 0x11d   : > { %4128 = vst [vmem:[#allocation25_spill] sm:$0xff] %v3476_v25  ;;  %4129 = vst [vmem:[#allocation26_spill] sm:$0xff] %v3479_v31  ;;  %v3482_v62 = vadd.f32 %v651_v32, %v3389_v29  ;;  %v3485_v10 = vadd.f32 %v764_v7, %v3391_v30 }
 0x11e   : > { %v653_v11 = vpop.f32.mrf.mxu0  ;;  %v766_v15 = vpop.f32.mrf.mxu1 }
 0x11f   : > { %4130 = vst [vmem:[#allocation27_spill] sm:$0xff] %v3482_v62  ;;  %4131 = vst [vmem:[#allocation28_spill] sm:$0xff] %v3485_v10  ;;  %v3488_v14 = vadd.f32 %v653_v11, %v3393_v33  ;;  %v3491_v3 = vadd.f32 %v766_v15, %v3395_v36 }
 0x120   : > { %v657_v22 = vpop.f32.mrf.mxu0  ;;  %v770_v25 = vpop.f32.mrf.mxu1 }
 0x121   : > { %4132 = vst [vmem:[#allocation29_spill] sm:$0xff] %v3488_v14  ;;  %4133 = vst [vmem:[#allocation30_spill] sm:$0xff] %v3491_v3  ;;  %v3494_v26 = vadd.f32 %v657_v22, %v3389_v29  ;;  %v3497_v31 = vadd.f32 %v770_v25, %v3391_v30 }
 0x122   : > { %v659_v32 = vpop.f32.mrf.mxu0  ;;  %v772_v62 = vpop.f32.mrf.mxu1 }
 0x123   : > { %4134 = vst [vmem:[#allocation31_spill] sm:$0xff] %v3494_v26  ;;  %4135 = vst [vmem:[#allocation32_spill] sm:$0xff] %v3497_v31  ;;  %v3500_v7 = vadd.f32 %v659_v32, %v3393_v33  ;;  %v3503_v10 = vadd.f32 %v772_v62, %v3395_v36 }
 0x124   : > { %v661_v11 = vpop.f32.mrf.mxu0  ;;  %v774_v14 = vpop.f32.mrf.mxu1 }
 0x125   : > { %4136 = vst [vmem:[#allocation33_spill] sm:$0xff] %v3500_v7  ;;  %4137 = vst [vmem:[#allocation34_spill] sm:$0xff] %v3503_v10  ;;  %v3506_v15 = vadd.f32 %v661_v11, %v3389_v29  ;;  %v3509_v3 = vadd.f32 %v774_v14, %v3391_v30 }
 0x126   : > { %v663_v22 = vpop.f32.mrf.mxu0  ;;  %v776_v26 = vpop.f32.mrf.mxu1 }
 0x127   : > { %4138 = vst [vmem:[#allocation35_spill] sm:$0xff] %v3506_v15  ;;  %4139 = vst [vmem:[#allocation36_spill] sm:$0xff] %v3509_v3  ;;  %v3512_v25 = vadd.f32 %v663_v22, %v3393_v33  ;;  %v3515_v31 = vadd.f32 %v776_v26, %v3395_v36 }
 0x128   : > { %v667_v32 = vpop.f32.mrf.mxu0  ;;  %v780_v7 = vpop.f32.mrf.mxu1 }
 0x129   : > { %4140 = vst [vmem:[#allocation37_spill] sm:$0xff] %v3512_v25  ;;  %4141 = vst [vmem:[#allocation38_spill] sm:$0xff] %v3515_v31  ;;  %v3518_v62 = vadd.f32 %v667_v32, %v3389_v29  ;;  %v3521_v10 = vadd.f32 %v780_v7, %v3391_v30 }
 0x12a   : > { %v669_v11 = vpop.f32.mrf.mxu0  ;;  %v782_v15 = vpop.f32.mrf.mxu1 }
 0x12b   : > { %4142 = vst [vmem:[#allocation39_spill] sm:$0xff] %v3518_v62  ;;  %4143 = vst [vmem:[#allocation40_spill] sm:$0xff] %v3521_v10  ;;  %v3524_v14 = vadd.f32 %v669_v11, %v3393_v33  ;;  %v3527_v3 = vadd.f32 %v782_v15, %v3395_v36 }
 0x12c   : > { %v671_v22 = vpop.f32.mrf.mxu0  ;;  %v784_v25 = vpop.f32.mrf.mxu1 }
 0x12d   : > { %4144 = vst [vmem:[#allocation41_spill] sm:$0xff] %v3524_v14  ;;  %4145 = vst [vmem:[#allocation42_spill] sm:$0xff] %v3527_v3  ;;  %v3530_v26 = vadd.f32 %v671_v22, %v3389_v29  ;;  %v3533_v31 = vadd.f32 %v784_v25, %v3391_v30 }
 0x12e   : > { %v673_v32 = vpop.f32.mrf.mxu0  ;;  %v786_v62 = vpop.f32.mrf.mxu1 }
 0x12f   : > { %4146 = vst [vmem:[#allocation43_spill] sm:$0xff] %v3530_v26  ;;  %4147 = vst [vmem:[#allocation44_spill] sm:$0xff] %v3533_v31  ;;  %v3536_v7 = vadd.f32 %v673_v32, %v3393_v33  ;;  %v3539_v10 = vadd.f32 %v786_v62, %v3395_v36 }
 0x130   : > { %v677_v11 = vpop.f32.mrf.mxu0  ;;  %v790_v14 = vpop.f32.mrf.mxu1 }
 0x131   : > { %4148 = vst [vmem:[#allocation45_spill] sm:$0xff] %v3536_v7  ;;  %4149 = vst [vmem:[#allocation46_spill] sm:$0xff] %v3539_v10  ;;  %v3542_v15 = vadd.f32 %v677_v11, %v3389_v29  ;;  %v3545_v3 = vadd.f32 %v790_v14, %v3391_v30  ;;  %v608_v14 = vadd.f32 %v3370_v16, %v3389_v29 }
 0x132   : > { %v679_v22 = vpop.f32.mrf.mxu0  ;;  %v792_v26 = vpop.f32.mrf.mxu1  ;;  %v614_v16 = vadd.f32 %v3385_v27, %v3393_v33 }
 0x133   : > { %4150 = vst [vmem:[#allocation47_spill] sm:$0xff] %v3542_v15  ;;  %4151 = vst [vmem:[#allocation48_spill] sm:$0xff] %v3545_v3  ;;  %v3548_v25 = vadd.f32 %v679_v22, %v3393_v33  ;;  %v3551_v31 = vadd.f32 %v792_v26, %v3395_v36 }
 0x134   : > { %v681_v32 = vpop.f32.mrf.mxu0  ;;  %v794_v7 = vpop.f32.mrf.mxu1 }
 0x135   : > { %4152 = vst [vmem:[#allocation49_spill] sm:$0xff] %v3548_v25  ;;  %4153 = vst [vmem:[#allocation50_spill] sm:$0xff] %v3551_v31  ;;  %v3554_v62 = vadd.f32 %v681_v32, %v3389_v29  ;;  %v3557_v10 = vadd.f32 %v794_v7, %v3391_v30  ;;  %v610_v31 = vadd.f32 %v3374_v18, %v3393_v33 }
 0x136   : > { %v683_v11 = vpop.f32.mrf.mxu0  ;;  %v796_v15 = vpop.f32.mrf.mxu1  ;;  %v612_v7 = vadd.f32 %v3381_v23, %v3389_v29  ;;  %v723_v23 = vadd.f32 %v3376_v19, %v3395_v36 }
 0x137   : > { %4154 = vst [vmem:[#allocation51_spill] sm:$0xff] %v3554_v62  ;;  %4155 = vst [vmem:[#allocation52_spill] sm:$0xff] %v3557_v10  ;;  %v3562_v3 = vadd.f32 %v683_v11, %v3393_v33  ;;  %v3565_v22 = vadd.f32 %v796_v15, %v3395_v36  ;;  %v727_v33 = vadd.f32 %v3387_v28, %v3395_v36 }
 0x138   : > { %v1030_v26 = vpop.f32.mrf.mxu0  ;;  %v1073_v62 = vpop.f32.mrf.mxu1 }
 0x139   : > { %4156 = vst [vmem:[#allocation53_spill] sm:$0xff] %v3562_v3  ;;  %4157 = vst [vmem:[#allocation54_spill] sm:$0xff] %v3565_v22  ;;  %v1082_v32 = vadd.f32 %v1030_v26, %v608_v14 }
 0x13a   : > { %v1032_v25 = vpop.f32.mrf.mxu0  ;;  %v1075_v15 = vpop.f32.mrf.mxu1 }
 0x13b   : > { %v2410_v10 = vmul.f32 -1.442695, %v1082_v32  ;;  %v1083_v13 = vadd.f32 %v1032_v25, %v610_v31  ;;  %v1085_v29 = vadd.f32 %v1075_v15, %v723_v23  ;;  %v721_v31 = vadd.f32 %v3372_v17, %v3391_v30 }
 0x13c   : > { %v1034_v21 = vpop.f32.mrf.mxu0  ;;  %v1077_v14 = vpop.f32.mrf.mxu1 }
 0x13d   : > { %2634 = vpow2.f32 %v2410_v10  ;;  %v2412_v11 = vmul.f32 -1.442695, %v1083_v13  ;;  %v1086_v22 = vadd.f32 %v1034_v21, %v612_v7  ;;  %v1084_v13 = vadd.f32 %v1073_v62, %v721_v31 }
 0x13e   : > { %v1036_v3 = vpop.f32.mrf.mxu0  ;;  %v1079_v27 = vpop.f32.mrf.mxu1  ;;  %v725_v21 = vadd.f32 %v3383_v24, %v3391_v30 }
 0x13f   : > { %2636 = vpow2.f32 %v2412_v11  ;;  %v2411_v53 = vmul.f32 -1.442695, %v1086_v22  ;;  %v1087_v18 = vadd.f32 %v1036_v3, %v614_v16  ;;  %v2414_v3 = vmul.f32 -1.442695, %v1085_v29  ;;  %v833_v11 = vld [vmem:[#allocation3 + $0x8] sm:$0xff] }
 0x140   : > { %v1088_v25 = vadd.f32 %v1077_v14, %v725_v21 }
 0x141   : > { %2638 = vpow2.f32 %v2411_v53  ;;  %v2413_v26 = vmul.f32 -1.442695, %v1087_v18  ;;  %v1089_v53 = vadd.f32 %v1079_v27, %v727_v33  ;;  %v834_v27 = vld [vmem:[#allocation3] sm:$0xff] }
 0x143   : > { %2640 = vpow2.f32 %v2413_v26  ;;  %v2415_v32 = vmul.f32 -1.442695, %v1089_v53 }
 0x144   : > { %2642 = vtanh.f32 %v1084_v13 }
 0x145   : > { %2644 = vpow2.f32 %v2414_v3 }
 0x14a   : > { %v2635_v10 = vpop.eup %2634 }
 0x14b   : > { %v1096_v22 = vadd.f32 1.0, %v2635_v10 }
 0x14c   : > { %v2637_v19 = vpop.eup %2636 }
 0x14d   : > { %2646 = vrcp.f32 %v1096_v22  ;;  %v1108_v7 = vadd.f32 1.0, %v2637_v19 }
 0x14e   : > { %v2639_v17 = vpop.eup %2638  ;;  %2648 = vtanh.f32 %v1088_v25 }
 0x14f   : > { %2650 = vrcp.f32 %v1108_v7  ;;  %v1097_v16 = vadd.f32 1.0, %v2639_v17 }
 0x150   : > { %v2641_v28 = vpop.eup %2640  ;;  %2652 = vpow2.f32 %v2415_v32 }
 0x151   : > { %2654 = vrcp.f32 %v1097_v16  ;;  %v1109_v36 = vadd.f32 1.0, %v2641_v28  ;;  %v2643_v24 = vpop.eup %2642  ;;  %v4158_v28 = vmov 0  }
 0x152   : > { %v2645_v30 = vpop.eup %2644 }
 0x153   : > { %2656 = vrcp.f32 %v1109_v36  ;;  %v1122_v31 = vadd.f32 1.0, %v2645_v30 }
 0x155   : > { %2658 = vrcp.f32 %v1122_v31 }
 0x15a   : > { %v2647_v62 = vpop.eup %2646 }
 0x15b   : > { %v2649_v15 = vpop.eup %2648  ;;  %v1130_v18 = vmul.f32 %v2647_v62, %v2643_v24 }
 0x15c   : > { %v2651_v14 = vpop.eup %2650 }
 0x15d   : > { %v2653_v26 = vpop.eup %2652  ;;  %v1128_v23 = vmul.f32 %v2651_v14, %v833_v11 }
 0x15e   : > { %v2655_v29 = vpop.eup %2654  ;;  %v1123_v3 = vadd.f32 1.0, %v2653_v26 }
 0x15f   : > { %v3581_v33 = vadd.f32 %v1130_v18, %v1128_v23  ;;  %v1131_v13 = vmul.f32 %v2655_v29, %v2649_v15 }
 0x160   : > { %v2657_v21 = vpop.eup %2656 }
 0x161   : > { %v1129_v53 = vmul.f32 %v2657_v21, %v834_v27  ;;  %2660 = vtanh.f32 %v3581_v33  ;;  %v4159_v21 = vld [vmem:[#allocation4_spill] sm:$0xff] }
 0x162   : > { %2662 = vrcp.f32 %v1123_v3  ;;  %v2659_v25 = vpop.eup %2658 }
 0x163   : > { %v3583_v10 = vadd.f32 %v1131_v13, %v1129_v53  ;;  %v4160_v53 = vld [vmem:[#allocation6_spill] sm:$0xff] }
 0x165   : > { %2664 = vtanh.f32 %v3583_v10 }
 0x16e   : > { %v2661_v22 = vpop.eup %2660 }
 0x16f   : > { %v2663_v19 = vpop.eup %2662  ;;  %v1136_v7 = vmul.f32 %v2661_v22, %v2659_v25 }
 0x172   : > { %v2665_v32 = vpop.eup %2664 }
 0x173   : > { %v1137_v17 = vmul.f32 %v2665_v32, %v2663_v19  ;;  %v4161_v19 = vld [vmem:[#allocation5_spill] sm:$0xff] }
 0x175   : > { %v1138_v16 = vpack.c.bf16 %v1137_v17, %v1136_v7 }
 0x177   : > { %1172 = vmatmul.mubr.bf16.vlgmr.msra.gmra.mxu0 %v1138_v16  ;;  %1215 = vmatmul.mubr.bf16.vlgmr.msra.gmra.mxu1 %v1138_v16 }
 0x178   : > { %1283 = vmatpush1.bf16.msra.mxu0 %v3132_v37  ;;  %1326 = vmatpush1.bf16.msra.mxu1 %v3144_v39 }
 0x179   : > { %1284 = vmatprep.subr.bf16.mxu0 %v3138_v38  ;;  %1327 = vmatprep.subr.bf16.mxu1 %v3149_v40 }
 0x17a   : > { %1314 = vmatprep.mubr.bf16.mxu0 %v4158_v28  ;;  %1357 = vmatprep.mubr.bf16.mxu1 %v4158_v28 }
 0x17c   : > { %1285 = vmatpush1.bf16.msra.mxu0 %v3156_v41  ;;  %1328 = vmatpush1.bf16.msra.mxu1 %v3169_v43 }
 0x17d   : > { %1286 = vmatprep.subr.bf16.mxu0 %v3163_v42  ;;  %1329 = vmatprep.subr.bf16.mxu1 %v3188_v47 }
 0x180   : > { %1287 = vmatpush1.bf16.msra.mxu0 %v3177_v45  ;;  %1330 = vmatpush1.bf16.msra.mxu1 %v3194_v48 }
 0x181   : > { %1288 = vmatprep.subr.bf16.mxu0 %v3182_v46  ;;  %1331 = vmatprep.subr.bf16.mxu1 %v3199_v49 }
 0x184   : > { %1289 = vmatpush1.bf16.msra.mxu0 %v3207_v50  ;;  %1332 = vmatpush1.bf16.msra.mxu1 %v3220_v52 }
 0x185   : > { %1290 = vmatprep.subr.bf16.mxu0 %v3212_v51  ;;  %1333 = vmatprep.subr.bf16.mxu1 %v3233_v55 }
 0x188   : > { %1291 = vmatpush1.bf16.msra.mxu0 %v3227_v54  ;;  %1334 = vmatpush1.bf16.msra.mxu1 %v3245_v57 }
 0x189   : > { %1292 = vmatprep.subr.bf16.mxu0 %v3239_v56  ;;  %1335 = vmatprep.subr.bf16.mxu1 %v3250_v58 }
 0x18c   : > { %1293 = vmatpush1.bf16.msra.mxu0 %v3258_v59  ;;  %1336 = vmatpush1.bf16.msra.mxu1 %v3271_v61 }
 0x18d   : > { %1294 = vmatprep.subr.bf16.mxu0 %v3265_v60  ;;  %1337 = vmatprep.subr.bf16.mxu1 %v3284_v0 }
 0x190   : > { %1295 = vmatpush1.bf16.msra.mxu0 %v3279_v63  ;;  %1338 = vmatpush1.bf16.msra.mxu1 %v3296_v2 }
 0x191   : > { %1296 = vmatprep.subr.bf16.mxu0 %v3291_v1  ;;  %1339 = vmatprep.subr.bf16.mxu1 %v3301_v4 }
 0x194   : > { %1297 = vmatpush1.bf16.msra.mxu0 %v3310_v5  ;;  %1340 = vmatpush1.bf16.msra.mxu1 %v3317_v6 }
 0x195   : > { %1425 = vmatprep.subr.bf16.mxu0 %v3121_v34  ;;  %1468 = vmatprep.subr.bf16.mxu1 %v3126_v35 }
 0x237   : > { %v1173_v36 = vpop.f32.mrf.mxu0  ;;  %v1216_v30 = vpop.f32.mrf.mxu1 }
 0x238   : > { %v1225_v24 = vadd.f32 %v1173_v36, %v3398_v44 }
 0x239   : > { %v1175_v62 = vpop.f32.mrf.mxu0  ;;  %v1218_v26 = vpop.f32.mrf.mxu1 }
 0x23a   : > { %v2416_v11 = vmul.f32 -1.442695, %v1225_v24  ;;  %v1226_v15 = vadd.f32 %v1175_v62, %v3404_v8  ;;  %v1228_v44 = vadd.f32 %v1218_v26, %v3407_v9  ;;  %v1227_v8 = vadd.f32 %v1216_v30, %v4159_v21 }
 0x23b   : > { %v1177_v18 = vpop.f32.mrf.mxu0  ;;  %v1220_v35 = vpop.f32.mrf.mxu1 }
 0x23c   : > { %2666 = vpow2.f32 %v2416_v11  ;;  %v2418_v14 = vmul.f32 -1.442695, %v1226_v15  ;;  %v1229_v23 = vadd.f32 %v1177_v18, %v3410_v12  ;;  %v2420_v3 = vmul.f32 -1.442695, %v1228_v44 }
 0x23d   : > { %v1179_v29 = vpop.f32.mrf.mxu0  ;;  %v1222_v13 = vpop.f32.mrf.mxu1  ;;  %v1231_v12 = vadd.f32 %v1220_v35, %v4161_v19 }
 0x23e   : > { %2668 = vpow2.f32 %v2418_v14  ;;  %v2417_v31 = vmul.f32 -1.442695, %v1229_v23  ;;  %v1230_v34 = vadd.f32 %v1179_v29, %v3416_v20  ;;  %v1232_v25 = vadd.f32 %v1222_v13, %v4160_v53 }
 0x240   : > { %2670 = vpow2.f32 %v2417_v31  ;;  %v2419_v27 = vmul.f32 -1.442695, %v1230_v34  ;;  %v2421_v20 = vmul.f32 -1.442695, %v1232_v25 }
 0x242   : > { %2672 = vpow2.f32 %v2419_v27 }
 0x243   : > { %2674 = vtanh.f32 %v1227_v8 }
 0x244   : > { %2676 = vpow2.f32 %v2420_v3 }
 0x249   : > { %v2667_v22 = vpop.eup %2666 }
 0x24a   : > { %v1239_v32 = vadd.f32 1.0, %v2667_v22 }
 0x24b   : > { %v2669_v7 = vpop.eup %2668 }
 0x24c   : > { %2678 = vrcp.f32 %v1239_v32  ;;  %v1251_v17 = vadd.f32 1.0, %v2669_v7 }
 0x24d   : > { %v2671_v16 = vpop.eup %2670  ;;  %2680 = vtanh.f32 %v1231_v12 }
 0x24e   : > { %2682 = vrcp.f32 %v1251_v17  ;;  %v1240_v9 = vadd.f32 1.0, %v2671_v16 }
 0x24f   : > { %v2673_v36 = vpop.eup %2672  ;;  %2684 = vpow2.f32 %v2421_v20 }
 0x250   : > { %2686 = vrcp.f32 %v1240_v9  ;;  %v1252_v24 = vadd.f32 1.0, %v2673_v36  ;;  %v2675_v30 = vpop.eup %2674 }
 0x251   : > { %v2677_v62 = vpop.eup %2676 }
 0x252   : > { %2688 = vrcp.f32 %v1252_v24  ;;  %v1265_v31 = vadd.f32 1.0, %v2677_v62 }
 0x254   : > { %2690 = vrcp.f32 %v1265_v31 }
 0x259   : > { %v2679_v11 = vpop.eup %2678 }
 0x25a   : > { %v2681_v15 = vpop.eup %2680  ;;  %v1273_v18 = vmul.f32 %v2679_v11, %v2675_v30 }
 0x25b   : > { %v2683_v14 = vpop.eup %2682 }
 0x25c   : > { %v2685_v26 = vpop.eup %2684  ;;  %v1271_v23 = vmul.f32 %v2683_v14, %v3581_v33 }
 0x25d   : > { %v2687_v29 = vpop.eup %2686  ;;  %v1266_v44 = vadd.f32 1.0, %v2685_v26 }
 0x25e   : > { %v3630_v34 = vadd.f32 %v1273_v18, %v1271_v23  ;;  %v1274_v35 = vmul.f32 %v2687_v29, %v2681_v15 }
 0x25f   : > { %v2689_v27 = vpop.eup %2688 }
 0x260   : > { %v1272_v13 = vmul.f32 %v2689_v27, %v3583_v10  ;;  %2692 = vtanh.f32 %v3630_v34  ;;  %v4169_v10 = vld [vmem:[#allocation12_spill] sm:$0xff] }
 0x261   : > { %2694 = vrcp.f32 %v1266_v44  ;;  %v2691_v8 = vpop.eup %2690 }
 0x262   : > { %v3633_v21 = vadd.f32 %v1274_v35, %v1272_v13 }
 0x264   : > { %2696 = vtanh.f32 %v3633_v21 }
 0x26d   : > { %v2693_v3 = vpop.eup %2692 }
 0x26e   : > { %v2695_v33 = vpop.eup %2694  ;;  %v1279_v25 = vmul.f32 %v2693_v3, %v2691_v8 }
 0x271   : > { %v2697_v53 = vpop.eup %2696 }
 0x272   : > { %v1280_v22 = vmul.f32 %v2697_v53, %v2695_v33 }
 0x274   : > { %v1281_v19 = vpack.c.bf16 %v1280_v22, %v1279_v25 }
 0x276   : > { %1315 = vmatmul.mubr.bf16.vlgmr.msra.gmra.mxu0 %v1281_v19  ;;  %1358 = vmatmul.mubr.bf16.vlgmr.msra.gmra.mxu1 %v1281_v19 }
 0x277   : > { %1426 = vmatpush1.bf16.msra.mxu0 %v3132_v37  ;;  %1469 = vmatpush1.bf16.msra.mxu1 %v3144_v39  ;;  %v3672_v37 = vld [vmem:[%s4100_s2 + $0xe4] ss:$16 sps:$4 sm:$0xff]  }
 0x278   : > { %1427 = vmatprep.subr.bf16.mxu0 %v3138_v38  ;;  %1470 = vmatprep.subr.bf16.mxu1 %v3149_v40  ;;  %v3678_v38 = vld [vmem:[%s4100_s2 + $0xec] ss:$16 sps:$4 sm:$0xff]  }
 0x279   : > { %1457 = vmatprep.mubr.bf16.mxu0 %v4158_v28  ;;  %1500 = vmatprep.mubr.bf16.mxu1 %v4158_v28  ;;  %v4162_v40 = vld [vmem:[#allocation7_spill] sm:$0xff] }
 0x27b   : > { %1428 = vmatpush1.bf16.msra.mxu0 %v3156_v41  ;;  %1471 = vmatpush1.bf16.msra.mxu1 %v3169_v43 }
 0x27c   : > { %1429 = vmatprep.subr.bf16.mxu0 %v3163_v42  ;;  %1472 = vmatprep.subr.bf16.mxu1 %v3188_v47 }
 0x27f   : > { %1430 = vmatpush1.bf16.msra.mxu0 %v3177_v45  ;;  %1473 = vmatpush1.bf16.msra.mxu1 %v3194_v48 }
 0x280   : > { %1431 = vmatprep.subr.bf16.mxu0 %v3182_v46  ;;  %1474 = vmatprep.subr.bf16.mxu1 %v3199_v49  ;;  %v4163_v46 = vld [vmem:[#allocation9_spill] sm:$0xff] }
 0x283   : > { %1432 = vmatpush1.bf16.msra.mxu0 %v3207_v50  ;;  %1475 = vmatpush1.bf16.msra.mxu1 %v3220_v52 }
 0x284   : > { %1433 = vmatprep.subr.bf16.mxu0 %v3212_v51  ;;  %1476 = vmatprep.subr.bf16.mxu1 %v3233_v55  ;;  %v4164_v51 = vld [vmem:[#allocation11_spill] sm:$0xff] }
 0x287   : > { %1434 = vmatpush1.bf16.msra.mxu0 %v3227_v54  ;;  %1477 = vmatpush1.bf16.msra.mxu1 %v3245_v57 }
 0x288   : > { %1435 = vmatprep.subr.bf16.mxu0 %v3239_v56  ;;  %1478 = vmatprep.subr.bf16.mxu1 %v3250_v58  ;;  %v4165_v56 = vld [vmem:[#allocation13_spill] sm:$0xff] }
 0x28b   : > { %1436 = vmatpush1.bf16.msra.mxu0 %v3258_v59  ;;  %1479 = vmatpush1.bf16.msra.mxu1 %v3271_v61 }
 0x28c   : > { %1437 = vmatprep.subr.bf16.mxu0 %v3265_v60  ;;  %1480 = vmatprep.subr.bf16.mxu1 %v3284_v0  ;;  %v4166_v60 = vld [vmem:[#allocation10_spill] sm:$0xff]  ;;  %v4167_v0 = vld [vmem:[#allocation8_spill] sm:$0xff] }
 0x28f   : > { %1438 = vmatpush1.bf16.msra.mxu0 %v3279_v63  ;;  %1481 = vmatpush1.bf16.msra.mxu1 %v3296_v2 }
 0x290   : > { %1439 = vmatprep.subr.bf16.mxu0 %v3291_v1  ;;  %1482 = vmatprep.subr.bf16.mxu1 %v3301_v4  ;;  %v4168_v4 = vld [vmem:[#allocation14_spill] sm:$0xff] }
 0x293   : > { %1440 = vmatpush1.bf16.msra.mxu0 %v3310_v5  ;;  %1483 = vmatpush1.bf16.msra.mxu1 %v3317_v6 }
 0x294   : > { %1568 = vmatprep.subr.bf16.mxu0 %v3672_v37  ;;  %1611 = vmatprep.subr.bf16.mxu1 %v3678_v38 }
 0x336   : > { %v1316_v39 = vpop.f32.mrf.mxu0  ;;  %v1359_v42 = vpop.f32.mrf.mxu1 }
 0x337   : > { %v1368_v41 = vadd.f32 %v1316_v39, %v4162_v40  ;;  %v1370_v1 = vadd.f32 %v1359_v42, %v4167_v0  ;;  %v3706_v40 = vld [vmem:[%s4100_s2 + $0xe8] ss:$16 sps:$4 sm:$0xff]   ;;  %v3718_v42 = vld [vmem:[%s4100_s2 + $0xcc] ss:$16 sps:$4 sm:$0xff]   ;;  %v3834_v0 = vld [vmem:[%s4100_s2 + $0x24] ss:$16 sps:$4 sm:$0xff]  }
 0x338   : > { %v1318_v43 = vpop.f32.mrf.mxu0  ;;  %v1361_v50 = vpop.f32.mrf.mxu1 }
 0x339   : > { %v2422_v45 = vmul.f32 -1.442695, %v1368_v41  ;;  %v1369_v47 = vadd.f32 %v1318_v43, %v4163_v46  ;;  %v1371_v61 = vadd.f32 %v1361_v50, %v4166_v60  ;;  %v3712_v41 = vld [vmem:[%s4100_s2 + $0xc4] ss:$16 sps:$4 sm:$0xff]   ;;  %v3726_v43 = vld [vmem:[%s4100_s2 + $0xc0] ss:$16 sps:$4 sm:$0xff]  }
 0x33a   : > { %v1320_v48 = vpop.f32.mrf.mxu0  ;;  %v1363_v58 = vpop.f32.mrf.mxu1  ;;  %v3738_v46 = vld [vmem:[%s4100_s2 + $0xa4] ss:$16 sps:$4 sm:$0xff]   ;;  %v3816_v60 = vld [vmem:[%s4100_s2 + $0x4c] ss:$16 sps:$4 sm:$0xff]  }
 0x33b   : > { %2698 = vpow2.f32 %v2422_v45  ;;  %v2424_v49 = vmul.f32 -1.442695, %v1369_v47  ;;  %v1372_v52 = vadd.f32 %v1320_v48, %v4164_v51  ;;  %v2426_v2 = vmul.f32 -1.442695, %v1371_v61  ;;  %v3732_v45 = vld [vmem:[%s4100_s2 + $0xc8] ss:$16 sps:$4 sm:$0xff]  }
 0x33c   : > { %v1322_v54 = vpop.f32.mrf.mxu0  ;;  %v1365_v63 = vpop.f32.mrf.mxu1  ;;  %v1374_v12 = vadd.f32 %v1363_v58, %v4169_v10  ;;  %v3744_v47 = vld [vmem:[%s4100_s2 + $0xac] ss:$16 sps:$4 sm:$0xff]   ;;  %v3750_v48 = vld [vmem:[%s4100_s2 + $0xa0] ss:$16 sps:$4 sm:$0xff]   ;;  %v3762_v50 = vld [vmem:[%s4100_s2 + $0x84] ss:$16 sps:$4 sm:$0xff]  }
 0x33d   : > { %2700 = vpow2.f32 %v2424_v49  ;;  %v2423_v55 = vmul.f32 -1.442695, %v1372_v52  ;;  %v1373_v57 = vadd.f32 %v1322_v54, %v4165_v56  ;;  %v1375_v5 = vadd.f32 %v1365_v63, %v4168_v4  ;;  %v3756_v49 = vld [vmem:[%s4100_s2 + $0xa8] ss:$16 sps:$4 sm:$0xff]   ;;  %v3768_v51 = vld [vmem:[%s4100_s2 + $0x8c] ss:$16 sps:$4 sm:$0xff]  }
 0x33e   : > { %v3774_v52 = vld [vmem:[%s4100_s2 + $0x80] ss:$16 sps:$4 sm:$0xff]   ;;  %v3780_v54 = vld [vmem:[%s4100_s2 + $0x88] ss:$16 sps:$4 sm:$0xff]   ;;  %v3792_v56 = vld [vmem:[%s4100_s2 + $0x6c] ss:$16 sps:$4 sm:$0xff]  }
 0x33f   : > { %2702 = vpow2.f32 %v2423_v55  ;;  %v2425_v59 = vmul.f32 -1.442695, %v1373_v57  ;;  %v2427_v20 = vmul.f32 -1.442695, %v1375_v5  ;;  %v3786_v55 = vld [vmem:[%s4100_s2 + $0x64] ss:$16 sps:$4 sm:$0xff]  }
 0x340   : > { %v3798_v57 = vld [vmem:[%s4100_s2 + $0x60] ss:$16 sps:$4 sm:$0xff]   ;;  %v3804_v58 = vld [vmem:[%s4100_s2 + $0x68] ss:$16 sps:$4 sm:$0xff]   ;;  %v3858_v5 = vld [vmem:[%s4100_s2 + $0x4] ss:$16 sps:$4 sm:$0xff]  }
 0x341   : > { %2704 = vpow2.f32 %v2425_v59  ;;  %v3810_v59 = vld [vmem:[%s4100_s2 + $0x44] ss:$16 sps:$4 sm:$0xff]   ;;  %v3822_v61 = vld [vmem:[%s4100_s2 + $0x40] ss:$16 sps:$4 sm:$0xff]   ;;  %v3828_v63 = vld [vmem:[%s4100_s2 + $0x48] ss:$16 sps:$4 sm:$0xff]  }
 0x342   : > { %2706 = vtanh.f32 %v1370_v1  ;;  %v3840_v1 = vld [vmem:[%s4100_s2 + $0x2c] ss:$16 sps:$4 sm:$0xff]   ;;  %v3852_v4 = vld [vmem:[%s4100_s2 + $0x28] ss:$16 sps:$4 sm:$0xff]   ;;  %v3870_v10 = vld [vmem:[%s4100_s2] ss:$16 sps:$4 sm:$0xff]  }
 0x343   : > { %2708 = vpow2.f32 %v2426_v2  ;;  %v3846_v2 = vld [vmem:[%s4100_s2 + $0x20] ss:$16 sps:$4 sm:$0xff]  }
 0x348   : > { %v2699_v6 = vpop.eup %2698 }
 0x349   : > { %v1382_v32 = vadd.f32 1.0, %v2699_v6  ;;  %v3864_v6 = vld [vmem:[%s4100_s2 + $0xc] ss:$16 sps:$4 sm:$0xff]  }
 0x34a   : > { %v2701_v7 = vpop.eup %2700 }
 0x34b   : > { %2710 = vrcp.f32 %v1382_v32  ;;  %v1394_v17 = vadd.f32 1.0, %v2701_v7  ;;  %v4170_v7 = vld [vmem:[#allocation15_spill] sm:$0xff] }
 0x34c   : > { %v2703_v16 = vpop.eup %2702  ;;  %2712 = vtanh.f32 %v1374_v12  ;;  %v3876_v12 = vld [vmem:[%s4100_s2 + $0x8] ss:$16 sps:$4 sm:$0xff]  }
 0x34d   : > { %2714 = vrcp.f32 %v1394_v17  ;;  %v1383_v9 = vadd.f32 1.0, %v2703_v16 }
 0x34e   : > { %v2705_v36 = vpop.eup %2704  ;;  %2716 = vpow2.f32 %v2427_v20 }
 0x34f   : > { %2718 = vrcp.f32 %v1383_v9  ;;  %v1395_v24 = vadd.f32 1.0, %v2705_v36  ;;  %v2707_v30 = vpop.eup %2706  ;;  %v4171_v36 = vld [vmem:[#allocation17_spill] sm:$0xff] }
 0x350   : > { %v2709_v62 = vpop.eup %2708 }
 0x351   : > { %2720 = vrcp.f32 %v1395_v24  ;;  %v1408_v31 = vadd.f32 1.0, %v2709_v62 }
 0x353   : > { %2722 = vrcp.f32 %v1408_v31 }
 0x358   : > { %v2711_v11 = vpop.eup %2710 }
 0x359   : > { %v2713_v15 = vpop.eup %2712  ;;  %v1416_v18 = vmul.f32 %v2711_v11, %v2707_v30 }
 0x35a   : > { %v2715_v14 = vpop.eup %2714 }
 0x35b   : > { %v2717_v26 = vpop.eup %2716  ;;  %v1414_v23 = vmul.f32 %v2715_v14, %v3630_v34 }
 0x35c   : > { %v2719_v29 = vpop.eup %2718  ;;  %v1409_v13 = vadd.f32 1.0, %v2717_v26 }
 0x35d   : > { %v3690_v35 = vadd.f32 %v1416_v18, %v1414_v23  ;;  %v1417_v27 = vmul.f32 %v2719_v29, %v2713_v15  ;;  %v4172_v15 = vld [vmem:[#allocation19_spill] sm:$0xff]  ;;  %v4173_v23 = vld [vmem:[#allocation21_spill] sm:$0xff] }
 0x35e   : > { %v2721_v44 = vpop.eup %2720 }
 0x35f   : > { %v1415_v8 = vmul.f32 %v2721_v44, %v3633_v21  ;;  %2724 = vtanh.f32 %v3690_v35  ;;  %v3700_v21 = vld [vmem:[%s4100_s2 + $0xe0] ss:$16 sps:$4 sm:$0xff]  }
 0x360   : > { %2726 = vrcp.f32 %v1409_v13  ;;  %v2723_v33 = vpop.eup %2722  ;;  %v4174_v44 = vld [vmem:[#allocation18_spill] sm:$0xff] }
 0x361   : > { %v3693_v3 = vadd.f32 %v1417_v27, %v1415_v8 }
 0x363   : > { %2728 = vtanh.f32 %v3693_v3 }
 0x36c   : > { %v2725_v53 = vpop.eup %2724 }
 0x36d   : > { %v2727_v34 = vpop.eup %2726  ;;  %v1422_v22 = vmul.f32 %v2725_v53, %v2723_v33  ;;  %v4175_v33 = vld [vmem:[#allocation16_spill] sm:$0xff] }
 0x370   : > { %v2729_v25 = vpop.eup %2728 }
 0x371   : > { %v1423_v19 = vmul.f32 %v2729_v25, %v2727_v34  ;;  %v4176_v25 = vld [vmem:[#allocation22_spill] sm:$0xff] }
 0x373   : > { %v1424_v39 = vpack.c.bf16 %v1423_v19, %v1422_v22 }
 0x375   : > { %1458 = vmatmul.mubr.bf16.vlgmr.msra.gmra.mxu0 %v1424_v39  ;;  %1501 = vmatmul.mubr.bf16.vlgmr.msra.gmra.mxu1 %v1424_v39  ;;  %v4177_v39 = vld [vmem:[#allocation20_spill] sm:$0xff] }
 0x376   : > { %1569 = vmatpush1.bf16.msra.mxu0 %v3700_v21  ;;  %1612 = vmatpush1.bf16.msra.mxu1 %v3706_v40 }
 0x377   : > { %1570 = vmatprep.subr.bf16.mxu0 %v3712_v41  ;;  %1613 = vmatprep.subr.bf16.mxu1 %v3718_v42 }
 0x378   : > { %1600 = vmatprep.mubr.bf16.mxu0 %v4158_v28  ;;  %1643 = vmatprep.mubr.bf16.mxu1 %v4158_v28 }
 0x37a   : > { %1571 = vmatpush1.bf16.msra.mxu0 %v3726_v43  ;;  %1614 = vmatpush1.bf16.msra.mxu1 %v3732_v45 }
 0x37b   : > { %1572 = vmatprep.subr.bf16.mxu0 %v3738_v46  ;;  %1615 = vmatprep.subr.bf16.mxu1 %v3744_v47 }
 0x37e   : > { %1573 = vmatpush1.bf16.msra.mxu0 %v3750_v48  ;;  %1616 = vmatpush1.bf16.msra.mxu1 %v3756_v49 }
 0x37f   : > { %1574 = vmatprep.subr.bf16.mxu0 %v3762_v50  ;;  %1617 = vmatprep.subr.bf16.mxu1 %v3768_v51 }
 0x382   : > { %1575 = vmatpush1.bf16.msra.mxu0 %v3774_v52  ;;  %1618 = vmatpush1.bf16.msra.mxu1 %v3780_v54 }
 0x383   : > { %1576 = vmatprep.subr.bf16.mxu0 %v3786_v55  ;;  %1619 = vmatprep.subr.bf16.mxu1 %v3792_v56 }
 0x386   : > { %1577 = vmatpush1.bf16.msra.mxu0 %v3798_v57  ;;  %1620 = vmatpush1.bf16.msra.mxu1 %v3804_v58 }
 0x387   : > { %1578 = vmatprep.subr.bf16.mxu0 %v3810_v59  ;;  %1621 = vmatprep.subr.bf16.mxu1 %v3816_v60 }
 0x38a   : > { %1579 = vmatpush1.bf16.msra.mxu0 %v3822_v61  ;;  %1622 = vmatpush1.bf16.msra.mxu1 %v3828_v63 }
 0x38b   : > { %1580 = vmatprep.subr.bf16.mxu0 %v3834_v0  ;;  %1623 = vmatprep.subr.bf16.mxu1 %v3840_v1 }
 0x38e   : > { %1581 = vmatpush1.bf16.msra.mxu0 %v3846_v2  ;;  %1624 = vmatpush1.bf16.msra.mxu1 %v3852_v4 }
 0x38f   : > { %1582 = vmatprep.subr.bf16.mxu0 %v3858_v5  ;;  %1625 = vmatprep.subr.bf16.mxu1 %v3864_v6 }
 0x392   : > { %1583 = vmatpush1.bf16.msra.mxu0 %v3870_v10  ;;  %1626 = vmatpush1.bf16.msra.mxu1 %v3876_v12 }
 0x393   : > { %1711 = vmatprep.subr.bf16.mxu0 %v3672_v37  ;;  %1754 = vmatprep.subr.bf16.mxu1 %v3678_v38 }
 0x435   : > { %v1459_v32 = vpop.f32.mrf.mxu0  ;;  %v1502_v17 = vpop.f32.mrf.mxu1 }
 0x436   : > { %v1511_v20 = vadd.f32 %v1459_v32, %v4170_v7  ;;  %v1513_v53 = vadd.f32 %v1502_v17, %v4175_v33 }
 0x437   : > { %v1461_v16 = vpop.f32.mrf.mxu0  ;;  %v1504_v11 = vpop.f32.mrf.mxu1 }
 0x438   : > { %v2428_v9 = vmul.f32 -1.442695, %v1511_v20  ;;  %v1512_v24 = vadd.f32 %v1461_v16, %v4171_v36  ;;  %v1514_v13 = vadd.f32 %v1504_v11, %v4174_v44 }
 0x439   : > { %v1463_v30 = vpop.f32.mrf.mxu0  ;;  %v1506_v31 = vpop.f32.mrf.mxu1 }
 0x43a   : > { %2730 = vpow2.f32 %v2428_v9  ;;  %v2430_v62 = vmul.f32 -1.442695, %v1512_v24  ;;  %v1515_v18 = vadd.f32 %v1463_v30, %v4172_v15  ;;  %v2432_v34 = vmul.f32 -1.442695, %v1514_v13 }
 0x43b   : > { %v1465_v14 = vpop.f32.mrf.mxu0  ;;  %v1508_v8 = vpop.f32.mrf.mxu1  ;;  %v1517_v32 = vadd.f32 %v1506_v31, %v4177_v39 }
 0x43c   : > { %2732 = vpow2.f32 %v2430_v62  ;;  %v2429_v26 = vmul.f32 -1.442695, %v1515_v18  ;;  %v1516_v29 = vadd.f32 %v1465_v14, %v4173_v23  ;;  %v1518_v22 = vadd.f32 %v1508_v8, %v4176_v25 }
 0x43e   : > { %2734 = vpow2.f32 %v2429_v26  ;;  %v2431_v27 = vmul.f32 -1.442695, %v1516_v29  ;;  %v2433_v16 = vmul.f32 -1.442695, %v1518_v22 }
 0x440   : > { %2736 = vpow2.f32 %v2431_v27 }
 0x441   : > { %2738 = vtanh.f32 %v1513_v53 }
 0x442   : > { %2740 = vpow2.f32 %v2432_v34 }
 0x447   : > { %v2731_v19 = vpop.eup %2730 }
 0x448   : > { %v1525_v7 = vadd.f32 1.0, %v2731_v19 }
 0x449   : > { %v2733_v20 = vpop.eup %2732 }
 0x44a   : > { %2742 = vrcp.f32 %v1525_v7  ;;  %v1537_v9 = vadd.f32 1.0, %v2733_v20  ;;  %v4178_v20 = vld [vmem:[#allocation23_spill] sm:$0xff] }
 0x44b   : > { %v2735_v36 = vpop.eup %2734  ;;  %2744 = vtanh.f32 %v1517_v32 }
 0x44c   : > { %2746 = vrcp.f32 %v1537_v9  ;;  %v1526_v24 = vadd.f32 1.0, %v2735_v36 }
 0x44d   : > { %v2737_v30 = vpop.eup %2736  ;;  %2748 = vpow2.f32 %v2433_v16 }
 0x44e   : > { %2750 = vrcp.f32 %v1526_v24  ;;  %v1538_v17 = vadd.f32 1.0, %v2737_v30  ;;  %v2739_v62 = vpop.eup %2738  ;;  %v4179_v30 = vld [vmem:[#allocation25_spill] sm:$0xff] }
 0x44f   : > { %v2741_v11 = vpop.eup %2740 }
 0x450   : > { %2752 = vrcp.f32 %v1538_v17  ;;  %v1551_v27 = vadd.f32 1.0, %v2741_v11 }
 0x452   : > { %2754 = vrcp.f32 %v1551_v27 }
 0x457   : > { %v2743_v15 = vpop.eup %2742 }
 0x458   : > { %v2745_v18 = vpop.eup %2744  ;;  %v1559_v14 = vmul.f32 %v2743_v15, %v2739_v62 }
 0x459   : > { %v2747_v26 = vpop.eup %2746 }
 0x45a   : > { %v2749_v23 = vpop.eup %2748  ;;  %v1557_v29 = vmul.f32 %v2747_v26, %v3690_v35 }
 0x45b   : > { %v2751_v31 = vpop.eup %2750  ;;  %v1552_v33 = vadd.f32 1.0, %v2749_v23 }
 0x45c   : > { %v3890_v44 = vadd.f32 %v1559_v14, %v1557_v29  ;;  %v1560_v13 = vmul.f32 %v2751_v31, %v2745_v18  ;;  %v4180_v18 = vld [vmem:[#allocation27_spill] sm:$0xff]  ;;  %v4181_v29 = vld [vmem:[#allocation29_spill] sm:$0xff] }
 0x45d   : > { %v2753_v8 = vpop.eup %2752 }
 0x45e   : > { %v1558_v53 = vmul.f32 %v2753_v8, %v3693_v3  ;;  %2756 = vtanh.f32 %v3890_v44  ;;  %v4182_v8 = vld [vmem:[#allocation26_spill] sm:$0xff] }
 0x45f   : > { %2758 = vrcp.f32 %v1552_v33  ;;  %v2755_v25 = vpop.eup %2754 }
 0x460   : > { %v3893_v34 = vadd.f32 %v1560_v13, %v1558_v53 }
 0x462   : > { %2760 = vtanh.f32 %v3893_v34 }
 0x46b   : > { %v2757_v22 = vpop.eup %2756 }
 0x46c   : > { %v2759_v35 = vpop.eup %2758  ;;  %v1565_v39 = vmul.f32 %v2757_v22, %v2755_v25  ;;  %v4183_v25 = vld [vmem:[#allocation24_spill] sm:$0xff] }
 0x46f   : > { %v2761_v19 = vpop.eup %2760 }
 0x470   : > { %v1566_v32 = vmul.f32 %v2761_v19, %v2759_v35  ;;  %v4184_v19 = vld [vmem:[#allocation30_spill] sm:$0xff] }
 0x472   : > { %v1567_v7 = vpack.c.bf16 %v1566_v32, %v1565_v39 }
 0x474   : > { %1601 = vmatmul.mubr.bf16.vlgmr.msra.gmra.mxu0 %v1567_v7  ;;  %1644 = vmatmul.mubr.bf16.vlgmr.msra.gmra.mxu1 %v1567_v7  ;;  %v4185_v7 = vld [vmem:[#allocation28_spill] sm:$0xff] }
 0x475   : > { %1712 = vmatpush1.bf16.msra.mxu0 %v3700_v21  ;;  %1755 = vmatpush1.bf16.msra.mxu1 %v3706_v40 }
 0x476   : > { %1713 = vmatprep.subr.bf16.mxu0 %v3712_v41  ;;  %1756 = vmatprep.subr.bf16.mxu1 %v3718_v42 }
 0x477   : > { %1743 = vmatprep.mubr.bf16.mxu0 %v4158_v28  ;;  %1786 = vmatprep.mubr.bf16.mxu1 %v4158_v28 }
 0x479   : > { %1714 = vmatpush1.bf16.msra.mxu0 %v3726_v43  ;;  %1757 = vmatpush1.bf16.msra.mxu1 %v3732_v45 }
 0x47a   : > { %1715 = vmatprep.subr.bf16.mxu0 %v3738_v46  ;;  %1758 = vmatprep.subr.bf16.mxu1 %v3744_v47 }
 0x47d   : > { %1716 = vmatpush1.bf16.msra.mxu0 %v3750_v48  ;;  %1759 = vmatpush1.bf16.msra.mxu1 %v3756_v49 }
 0x47e   : > { %1717 = vmatprep.subr.bf16.mxu0 %v3762_v50  ;;  %1760 = vmatprep.subr.bf16.mxu1 %v3768_v51 }
 0x481   : > { %1718 = vmatpush1.bf16.msra.mxu0 %v3774_v52  ;;  %1761 = vmatpush1.bf16.msra.mxu1 %v3780_v54 }
 0x482   : > { %1719 = vmatprep.subr.bf16.mxu0 %v3786_v55  ;;  %1762 = vmatprep.subr.bf16.mxu1 %v3792_v56 }
 0x485   : > { %1720 = vmatpush1.bf16.msra.mxu0 %v3798_v57  ;;  %1763 = vmatpush1.bf16.msra.mxu1 %v3804_v58 }
 0x486   : > { %1721 = vmatprep.subr.bf16.mxu0 %v3810_v59  ;;  %1764 = vmatprep.subr.bf16.mxu1 %v3816_v60 }
 0x489   : > { %1722 = vmatpush1.bf16.msra.mxu0 %v3822_v61  ;;  %1765 = vmatpush1.bf16.msra.mxu1 %v3828_v63 }
 0x48a   : > { %1723 = vmatprep.subr.bf16.mxu0 %v3834_v0  ;;  %1766 = vmatprep.subr.bf16.mxu1 %v3840_v1 }
 0x48d   : > { %1724 = vmatpush1.bf16.msra.mxu0 %v3846_v2  ;;  %1767 = vmatpush1.bf16.msra.mxu1 %v3852_v4 }
 0x48e   : > { %1725 = vmatprep.subr.bf16.mxu0 %v3858_v5  ;;  %1768 = vmatprep.subr.bf16.mxu1 %v3864_v6 }
 0x491   : > { %1726 = vmatpush1.bf16.msra.mxu0 %v3870_v10  ;;  %1769 = vmatpush1.bf16.msra.mxu1 %v3876_v12 }
 0x492   : > { %1854 = vmatprep.subr.bf16.mxu0 %v3672_v37  ;;  %1897 = vmatprep.subr.bf16.mxu1 %v3678_v38 }
 0x534   : > { %v1602_v3 = vpop.f32.mrf.mxu0  ;;  %v1645_v9 = vpop.f32.mrf.mxu1 }
 0x535   : > { %v1654_v16 = vadd.f32 %v1602_v3, %v4178_v20  ;;  %v1656_v22 = vadd.f32 %v1645_v9, %v4183_v25 }
 0x536   : > { %v1604_v36 = vpop.f32.mrf.mxu0  ;;  %v1647_v15 = vpop.f32.mrf.mxu1 }
 0x537   : > { %v2434_v24 = vmul.f32 -1.442695, %v1654_v16  ;;  %v1655_v17 = vadd.f32 %v1604_v36, %v4179_v30  ;;  %v1657_v33 = vadd.f32 %v1647_v15, %v4182_v8 }
 0x538   : > { %v1606_v62 = vpop.f32.mrf.mxu0  ;;  %v1649_v27 = vpop.f32.mrf.mxu1 }
 0x539   : > { %2762 = vpow2.f32 %v2434_v24  ;;  %v2436_v11 = vmul.f32 -1.442695, %v1655_v17  ;;  %v1658_v14 = vadd.f32 %v1606_v62, %v4180_v18  ;;  %v2438_v35 = vmul.f32 -1.442695, %v1657_v33 }
 0x53a   : > { %v1608_v26 = vpop.f32.mrf.mxu0  ;;  %v1651_v53 = vpop.f32.mrf.mxu1  ;;  %v1660_v3 = vadd.f32 %v1649_v27, %v4185_v7 }
 0x53b   : > { %2764 = vpow2.f32 %v2436_v11  ;;  %v2435_v23 = vmul.f32 -1.442695, %v1658_v14  ;;  %v1659_v31 = vadd.f32 %v1608_v26, %v4181_v29  ;;  %v1661_v39 = vadd.f32 %v1651_v53, %v4184_v19 }
 0x53d   : > { %2766 = vpow2.f32 %v2435_v23  ;;  %v2437_v13 = vmul.f32 -1.442695, %v1659_v31  ;;  %v2439_v36 = vmul.f32 -1.442695, %v1661_v39 }
 0x53f   : > { %2768 = vpow2.f32 %v2437_v13 }
 0x540   : > { %2770 = vtanh.f32 %v1656_v22 }
 0x541   : > { %2772 = vpow2.f32 %v2438_v35 }
 0x546   : > { %v2763_v32 = vpop.eup %2762 }
 0x547   : > { %v1668_v20 = vadd.f32 1.0, %v2763_v32 }
 0x548   : > { %v2765_v16 = vpop.eup %2764 }
 0x549   : > { %2774 = vrcp.f32 %v1668_v20  ;;  %v1680_v24 = vadd.f32 1.0, %v2765_v16  ;;  %v4186_v16 = vld [vmem:[#allocation31_spill] sm:$0xff] }
 0x54a   : > { %v2767_v30 = vpop.eup %2766  ;;  %2776 = vtanh.f32 %v1660_v3 }
 0x54b   : > { %2778 = vrcp.f32 %v1680_v24  ;;  %v1669_v17 = vadd.f32 1.0, %v2767_v30 }
 0x54c   : > { %v2769_v62 = vpop.eup %2768  ;;  %2780 = vpow2.f32 %v2439_v36 }
 0x54d   : > { %2782 = vrcp.f32 %v1669_v17  ;;  %v1681_v9 = vadd.f32 1.0, %v2769_v62  ;;  %v2771_v11 = vpop.eup %2770  ;;  %v4187_v62 = vld [vmem:[#allocation33_spill] sm:$0xff] }
 0x54e   : > { %v2773_v15 = vpop.eup %2772 }
 0x54f   : > { %2784 = vrcp.f32 %v1681_v9  ;;  %v1694_v13 = vadd.f32 1.0, %v2773_v15 }
 0x551   : > { %2786 = vrcp.f32 %v1694_v13  ;;  %v4190_v13 = vld [vmem:[#allocation34_spill] sm:$0xff] }
 0x556   : > { %v2775_v18 = vpop.eup %2774 }
 0x557   : > { %v2777_v14 = vpop.eup %2776  ;;  %v1702_v26 = vmul.f32 %v2775_v18, %v2771_v11 }
 0x558   : > { %v2779_v23 = vpop.eup %2778 }
 0x559   : > { %v2781_v29 = vpop.eup %2780  ;;  %v1700_v31 = vmul.f32 %v2779_v23, %v3890_v44 }
 0x55a   : > { %v2783_v27 = vpop.eup %2782  ;;  %v1695_v25 = vadd.f32 1.0, %v2781_v29 }
 0x55b   : > { %v3940_v8 = vadd.f32 %v1702_v26, %v1700_v31  ;;  %v1703_v33 = vmul.f32 %v2783_v27, %v2777_v14  ;;  %v4188_v14 = vld [vmem:[#allocation35_spill] sm:$0xff] }
 0x55c   : > { %v2785_v53 = vpop.eup %2784 }
 0x55d   : > { %v1701_v22 = vmul.f32 %v2785_v53, %v3893_v34  ;;  %2788 = vtanh.f32 %v3940_v8 }
 0x55e   : > { %2790 = vrcp.f32 %v1695_v25  ;;  %v2787_v19 = vpop.eup %2786  ;;  %v4191_v25 = vld [vmem:[#allocation32_spill] sm:$0xff] }
 0x55f   : > { %v3943_v35 = vadd.f32 %v1703_v33, %v1701_v22 }
 0x561   : > { %2792 = vtanh.f32 %v3943_v35 }
 0x56a   : > { %v2789_v39 = vpop.eup %2788 }
 0x56b   : > { %v2791_v44 = vpop.eup %2790  ;;  %v1708_v7 = vmul.f32 %v2789_v39, %v2787_v19  ;;  %v4192_v39 = vld [vmem:[#allocation38_spill] sm:$0xff] }
 0x56e   : > { %v2793_v32 = vpop.eup %2792 }
 0x56f   : > { %v1709_v3 = vmul.f32 %v2793_v32, %v2791_v44 }
 0x571   : > { %v1710_v20 = vpack.c.bf16 %v1709_v3, %v1708_v7  ;;  %v4193_v7 = vld [vmem:[#allocation36_spill] sm:$0xff] }
 0x573   : > { %1744 = vmatmul.mubr.bf16.vlgmr.msra.gmra.mxu0 %v1710_v20  ;;  %1787 = vmatmul.mubr.bf16.vlgmr.msra.gmra.mxu1 %v1710_v20 }
 0x574   : > { %1855 = vmatpush1.bf16.msra.mxu0 %v3700_v21  ;;  %1898 = vmatpush1.bf16.msra.mxu1 %v3706_v40 }
 0x575   : > { %1856 = vmatprep.subr.bf16.mxu0 %v3712_v41  ;;  %1899 = vmatprep.subr.bf16.mxu1 %v3718_v42 }
 0x576   : > { %1886 = vmatprep.mubr.bf16.mxu0 %v4158_v28  ;;  %1929 = vmatprep.mubr.bf16.mxu1 %v4158_v28 }
 0x578   : > { %1857 = vmatpush1.bf16.msra.mxu0 %v3726_v43  ;;  %1900 = vmatpush1.bf16.msra.mxu1 %v3732_v45 }
 0x579   : > { %1858 = vmatprep.subr.bf16.mxu0 %v3738_v46  ;;  %1901 = vmatprep.subr.bf16.mxu1 %v3744_v47 }
 0x57c   : > { %1859 = vmatpush1.bf16.msra.mxu0 %v3750_v48  ;;  %1902 = vmatpush1.bf16.msra.mxu1 %v3756_v49 }
 0x57d   : > { %1860 = vmatprep.subr.bf16.mxu0 %v3762_v50  ;;  %1903 = vmatprep.subr.bf16.mxu1 %v3768_v51 }
 0x580   : > { %1861 = vmatpush1.bf16.msra.mxu0 %v3774_v52  ;;  %1904 = vmatpush1.bf16.msra.mxu1 %v3780_v54 }
 0x581   : > { %1862 = vmatprep.subr.bf16.mxu0 %v3786_v55  ;;  %1905 = vmatprep.subr.bf16.mxu1 %v3792_v56 }
 0x584   : > { %1863 = vmatpush1.bf16.msra.mxu0 %v3798_v57  ;;  %1906 = vmatpush1.bf16.msra.mxu1 %v3804_v58 }
 0x585   : > { %1864 = vmatprep.subr.bf16.mxu0 %v3810_v59  ;;  %1907 = vmatprep.subr.bf16.mxu1 %v3816_v60 }
 0x588   : > { %1865 = vmatpush1.bf16.msra.mxu0 %v3822_v61  ;;  %1908 = vmatpush1.bf16.msra.mxu1 %v3828_v63 }
 0x589   : > { %1866 = vmatprep.subr.bf16.mxu0 %v3834_v0  ;;  %1909 = vmatprep.subr.bf16.mxu1 %v3840_v1 }
 0x58c   : > { %1867 = vmatpush1.bf16.msra.mxu0 %v3846_v2  ;;  %1910 = vmatpush1.bf16.msra.mxu1 %v3852_v4 }
 0x58d   : > { %1868 = vmatprep.subr.bf16.mxu0 %v3858_v5  ;;  %1911 = vmatprep.subr.bf16.mxu1 %v3864_v6 }
 0x590   : > { %1869 = vmatpush1.bf16.msra.mxu0 %v3870_v10  ;;  %1912 = vmatpush1.bf16.msra.mxu1 %v3876_v12 }
 0x591   : > { %1997 = vmatprep.subr.bf16.mxu0 %v3672_v37  ;;  %2040 = vmatprep.subr.bf16.mxu1 %v3678_v38  ;;  %v4189_v37 = vld [vmem:[#allocation37_spill] sm:$0xff] }
 0x633   : > { %v1745_v34 = vpop.f32.mrf.mxu0  ;;  %v1788_v24 = vpop.f32.mrf.mxu1 }
 0x634   : > { %v1797_v36 = vadd.f32 %v1745_v34, %v4186_v16  ;;  %v1799_v22 = vadd.f32 %v1788_v24, %v4191_v25 }
 0x635   : > { %v1747_v30 = vpop.f32.mrf.mxu0  ;;  %v1790_v18 = vpop.f32.mrf.mxu1 }
 0x636   : > { %v2440_v17 = vmul.f32 -1.442695, %v1797_v36  ;;  %v1798_v9 = vadd.f32 %v1747_v30, %v4187_v62  ;;  %v1800_v33 = vadd.f32 %v1790_v18, %v4190_v13 }
 0x637   : > { %v1749_v11 = vpop.f32.mrf.mxu0  ;;  %v1792_v38 = vpop.f32.mrf.mxu1 }
 0x638   : > { %2794 = vpow2.f32 %v2440_v17  ;;  %v2442_v15 = vmul.f32 -1.442695, %v1798_v9  ;;  %v1801_v26 = vadd.f32 %v1749_v11, %v4188_v14  ;;  %v2444_v19 = vmul.f32 -1.442695, %v1800_v33 }
 0x639   : > { %v1751_v23 = vpop.f32.mrf.mxu0  ;;  %v1794_v53 = vpop.f32.mrf.mxu1  ;;  %v1803_v3 = vadd.f32 %v1792_v38, %v4193_v7 }
 0x63a   : > { %2796 = vpow2.f32 %v2442_v15  ;;  %v2441_v29 = vmul.f32 -1.442695, %v1801_v26  ;;  %v1802_v31 = vadd.f32 %v1751_v23, %v4189_v37  ;;  %v1804_v44 = vadd.f32 %v1794_v53, %v4192_v39 }
 0x63c   : > { %2798 = vpow2.f32 %v2441_v29  ;;  %v2443_v27 = vmul.f32 -1.442695, %v1802_v31  ;;  %v2445_v16 = vmul.f32 -1.442695, %v1804_v44 }
 0x63e   : > { %2800 = vpow2.f32 %v2443_v27 }
 0x63f   : > { %2802 = vtanh.f32 %v1799_v22 }
 0x640   : > { %2804 = vpow2.f32 %v2444_v19 }
 0x645   : > { %v2795_v32 = vpop.eup %2794 }
 0x646   : > { %v1811_v20 = vadd.f32 1.0, %v2795_v32 }
 0x647   : > { %v2797_v34 = vpop.eup %2796 }
 0x648   : > { %2806 = vrcp.f32 %v1811_v20  ;;  %v1823_v36 = vadd.f32 1.0, %v2797_v34 }
 0x649   : > { %v2799_v30 = vpop.eup %2798  ;;  %2808 = vtanh.f32 %v1803_v3 }
 0x64a   : > { %2810 = vrcp.f32 %v1823_v36  ;;  %v1812_v17 = vadd.f32 1.0, %v2799_v30 }
 0x64b   : > { %v2801_v62 = vpop.eup %2800  ;;  %2812 = vpow2.f32 %v2445_v16 }
 0x64c   : > { %2814 = vrcp.f32 %v1812_v17  ;;  %v1824_v24 = vadd.f32 1.0, %v2801_v62  ;;  %v2803_v9 = vpop.eup %2802 }
 0x64d   : > { %v2805_v11 = vpop.eup %2804 }
 0x64e   : > { %2816 = vrcp.f32 %v1824_v24  ;;  %v1837_v31 = vadd.f32 1.0, %v2805_v11 }
 0x650   : > { %2818 = vrcp.f32 %v1837_v31 }
 0x655   : > { %v2807_v15 = vpop.eup %2806 }
 0x656   : > { %v2809_v18 = vpop.eup %2808  ;;  %v1845_v14 = vmul.f32 %v2807_v15, %v2803_v9 }
 0x657   : > { %v2811_v26 = vpop.eup %2810 }
 0x658   : > { %v2813_v23 = vpop.eup %2812  ;;  %v1843_v29 = vmul.f32 %v2811_v26, %v3940_v8 }
 0x659   : > { %v2815_v37 = vpop.eup %2814  ;;  %v1838_v33 = vadd.f32 1.0, %v2813_v23 }
 0x65a   : > { %v3990_v38 = vadd.f32 %v1845_v14, %v1843_v29  ;;  %v1846_v27 = vmul.f32 %v2815_v37, %v2809_v18 }
 0x65b   : > { %v2817_v13 = vpop.eup %2816 }
 0x65c   : > { %v1844_v53 = vmul.f32 %v2817_v13, %v3943_v35  ;;  %2820 = vtanh.f32 %v3990_v38 }
 0x65d   : > { %2822 = vrcp.f32 %v1838_v33  ;;  %v2819_v22 = vpop.eup %2818 }
 0x65e   : > { %v3993_v25 = vadd.f32 %v1846_v27, %v1844_v53 }
 0x660   : > { %2824 = vtanh.f32 %v3993_v25 }
 0x669   : > { %v2821_v19 = vpop.eup %2820 }
 0x66a   : > { %v2823_v8 = vpop.eup %2822  ;;  %v1851_v44 = vmul.f32 %v2821_v19, %v2819_v22 }
 0x66d   : > { %v2825_v39 = vpop.eup %2824 }
 0x66e   : > { %v1852_v32 = vmul.f32 %v2825_v39, %v2823_v8 }
 0x670   : > { %v1853_v7 = vpack.c.bf16 %v1852_v32, %v1851_v44 }
 0x672   : > { %1887 = vmatmul.mubr.bf16.vlgmr.msra.gmra.mxu0 %v1853_v7  ;;  %1930 = vmatmul.mubr.bf16.vlgmr.msra.gmra.mxu1 %v1853_v7  ;;  %v4202_v7 = vld [vmem:[#allocation47_spill] sm:$0xff] }
 0x673   : > { %1998 = vmatpush1.bf16.msra.mxu0 %v3700_v21  ;;  %2041 = vmatpush1.bf16.msra.mxu1 %v3706_v40  ;;  %v4194_v21 = vld [vmem:[#allocation39_spill] sm:$0xff] }
 0x674   : > { %1999 = vmatprep.subr.bf16.mxu0 %v3712_v41  ;;  %2042 = vmatprep.subr.bf16.mxu1 %v3718_v42 }
 0x675   : > { %2029 = vmatprep.mubr.bf16.mxu0 %v4158_v28  ;;  %2072 = vmatprep.mubr.bf16.mxu1 %v4158_v28 }
 0x677   : > { %2000 = vmatpush1.bf16.msra.mxu0 %v3726_v43  ;;  %2043 = vmatpush1.bf16.msra.mxu1 %v3732_v45  ;;  %v4195_v45 = vld [vmem:[#allocation41_spill] sm:$0xff] }
 0x678   : > { %2001 = vmatprep.subr.bf16.mxu0 %v3738_v46  ;;  %2044 = vmatprep.subr.bf16.mxu1 %v3744_v47 }
 0x67b   : > { %2002 = vmatpush1.bf16.msra.mxu0 %v3750_v48  ;;  %2045 = vmatpush1.bf16.msra.mxu1 %v3756_v49 }
 0x67c   : > { %2003 = vmatprep.subr.bf16.mxu0 %v3762_v50  ;;  %2046 = vmatprep.subr.bf16.mxu1 %v3768_v51  ;;  %v4196_v50 = vld [vmem:[#allocation43_spill] sm:$0xff] }
 0x67f   : > { %2004 = vmatpush1.bf16.msra.mxu0 %v3774_v52  ;;  %2047 = vmatpush1.bf16.msra.mxu1 %v3780_v54 }
 0x680   : > { %2005 = vmatprep.subr.bf16.mxu0 %v3786_v55  ;;  %2048 = vmatprep.subr.bf16.mxu1 %v3792_v56  ;;  %v4197_v55 = vld [vmem:[#allocation45_spill] sm:$0xff] }
 0x683   : > { %2006 = vmatpush1.bf16.msra.mxu0 %v3798_v57  ;;  %2049 = vmatpush1.bf16.msra.mxu1 %v3804_v58 }
 0x684   : > { %2007 = vmatprep.subr.bf16.mxu0 %v3810_v59  ;;  %2050 = vmatprep.subr.bf16.mxu1 %v3816_v60  ;;  %v4198_v59 = vld [vmem:[#allocation42_spill] sm:$0xff] }
 0x687   : > { %2008 = vmatpush1.bf16.msra.mxu0 %v3822_v61  ;;  %2051 = vmatpush1.bf16.msra.mxu1 %v3828_v63  ;;  %v4199_v63 = vld [vmem:[#allocation40_spill] sm:$0xff] }
 0x688   : > { %2009 = vmatprep.subr.bf16.mxu0 %v3834_v0  ;;  %2052 = vmatprep.subr.bf16.mxu1 %v3840_v1 }
 0x68b   : > { %2010 = vmatpush1.bf16.msra.mxu0 %v3846_v2  ;;  %2053 = vmatpush1.bf16.msra.mxu1 %v3852_v4  ;;  %v4200_v2 = vld [vmem:[#allocation46_spill] sm:$0xff] }
 0x68c   : > { %2011 = vmatprep.subr.bf16.mxu0 %v3858_v5  ;;  %2054 = vmatprep.subr.bf16.mxu1 %v3864_v6  ;;  %v4201_v6 = vld [vmem:[#allocation44_spill] sm:$0xff] }
 0x68f   : > { %2012 = vmatpush1.bf16.msra.mxu0 %v3870_v10  ;;  %2055 = vmatpush1.bf16.msra.mxu1 %v3876_v12 }
 0x732   : > { %v1888_v28 = vpop.f32.mrf.mxu0  ;;  %v1931_v41 = vpop.f32.mrf.mxu1 }
 0x733   : > { %v1940_v40 = vadd.f32 %v1888_v28, %v4194_v21  ;;  %v1942_v0 = vadd.f32 %v1931_v41, %v4199_v63  ;;  %v4203_v41 = vld [vmem:[#allocation49_spill] sm:$0xff]  ;;  %v4208_v63 = vld [vmem:[#allocation54_spill] sm:$0xff] }
 0x734   : > { %v1890_v42 = vpop.f32.mrf.mxu0  ;;  %v1933_v49 = vpop.f32.mrf.mxu1 }
 0x735   : > { %v2446_v43 = vmul.f32 -1.442695, %v1940_v40  ;;  %v1941_v46 = vadd.f32 %v1890_v42, %v4195_v45  ;;  %v1943_v60 = vadd.f32 %v1933_v49, %v4198_v59  ;;  %v4207_v59 = vld [vmem:[#allocation48_spill] sm:$0xff] }
 0x736   : > { %v1892_v47 = vpop.f32.mrf.mxu0  ;;  %v1935_v57 = vpop.f32.mrf.mxu1 }
 0x737   : > { %2826 = vpow2.f32 %v2446_v43  ;;  %v2448_v48 = vmul.f32 -1.442695, %v1941_v46  ;;  %v1944_v51 = vadd.f32 %v1892_v47, %v4196_v50  ;;  %v2450_v1 = vmul.f32 -1.442695, %v1943_v60  ;;  %v4204_v47 = vld [vmem:[#allocation51_spill] sm:$0xff] }
 0x738   : > { %v1894_v52 = vpop.f32.mrf.mxu0  ;;  %v1937_v61 = vpop.f32.mrf.mxu1  ;;  %v1946_v10 = vadd.f32 %v1935_v57, %v4201_v6 }
 0x739   : > { %2828 = vpow2.f32 %v2448_v48  ;;  %v2447_v54 = vmul.f32 -1.442695, %v1944_v51  ;;  %v1945_v56 = vadd.f32 %v1894_v52, %v4197_v55  ;;  %v1947_v4 = vadd.f32 %v1937_v61, %v4200_v2  ;;  %v4205_v51 = vld [vmem:[#allocation53_spill] sm:$0xff]  ;;  %v4209_v2 = vld [vmem:[#allocation52_spill] sm:$0xff] }
 0x73b   : > { %2830 = vpow2.f32 %v2447_v54  ;;  %v2449_v58 = vmul.f32 -1.442695, %v1945_v56  ;;  %v2451_v3 = vmul.f32 -1.442695, %v1947_v4  ;;  %v4206_v56 = vld [vmem:[#allocation50_spill] sm:$0xff] }
 0x73d   : > { %2832 = vpow2.f32 %v2449_v58 }
 0x73e   : > { %2834 = vtanh.f32 %v1942_v0 }
 0x73f   : > { %2836 = vpow2.f32 %v2450_v1 }
 0x744   : > { %v2827_v5 = vpop.eup %2826 }
 0x745   : > { %v1954_v12 = vadd.f32 1.0, %v2827_v5 }
 0x746   : > { %v2829_v35 = vpop.eup %2828 }
 0x747   : > { %2838 = vrcp.f32 %v1954_v12  ;;  %v1966_v20 = vadd.f32 1.0, %v2829_v35 }
 0x748   : > { %v2831_v34 = vpop.eup %2830  ;;  %2840 = vtanh.f32 %v1946_v10 }
 0x749   : > { %2842 = vrcp.f32 %v1966_v20  ;;  %v1955_v16 = vadd.f32 1.0, %v2831_v34 }
 0x74a   : > { %v2833_v36 = vpop.eup %2832  ;;  %2844 = vpow2.f32 %v2451_v3 }
 0x74b   : > { %2846 = vrcp.f32 %v1955_v16  ;;  %v1967_v30 = vadd.f32 1.0, %v2833_v36  ;;  %v2835_v17 = vpop.eup %2834 }
 0x74c   : > { %v2837_v62 = vpop.eup %2836 }
 0x74d   : > { %2848 = vrcp.f32 %v1967_v30  ;;  %v1980_v23 = vadd.f32 1.0, %v2837_v62 }
 0x74f   : > { %2850 = vrcp.f32 %v1980_v23 }
 0x754   : > { %v2839_v24 = vpop.eup %2838 }
 0x755   : > { %v2841_v9 = vpop.eup %2840  ;;  %v1988_v11 = vmul.f32 %v2839_v24, %v2835_v17 }
 0x756   : > { %v2843_v15 = vpop.eup %2842 }
 0x757   : > { %v2845_v18 = vpop.eup %2844  ;;  %v1986_v14 = vmul.f32 %v2843_v15, %v3990_v38 }
 0x758   : > { %v2847_v26 = vpop.eup %2846  ;;  %v1981_v27 = vadd.f32 1.0, %v2845_v18 }
 0x759   : > { %v4038_v29 = vadd.f32 %v1988_v11, %v1986_v14  ;;  %v1989_v37 = vmul.f32 %v2847_v26, %v2841_v9 }
 0x75a   : > { %v2849_v31 = vpop.eup %2848 }
 0x75b   : > { %v1987_v13 = vmul.f32 %v2849_v31, %v3993_v25  ;;  %2852 = vtanh.f32 %v4038_v29 }
 0x75c   : > { %2854 = vrcp.f32 %v1981_v27  ;;  %v2851_v53 = vpop.eup %2850 }
 0x75d   : > { %v4041_v33 = vadd.f32 %v1989_v37, %v1987_v13 }
 0x75f   : > { %2856 = vtanh.f32 %v4041_v33 }
 0x768   : > { %v2853_v22 = vpop.eup %2852 }
 0x769   : > { %v2855_v38 = vpop.eup %2854  ;;  %v1994_v8 = vmul.f32 %v2853_v22, %v2851_v53 }
 0x76c   : > { %v2857_v19 = vpop.eup %2856 }
 0x76d   : > { %v1995_v39 = vmul.f32 %v2857_v19, %v2855_v38 }
 0x76f   : > { %v1996_v44 = vpack.c.bf16 %v1995_v39, %v1994_v8 }
 0x771   : > { %2030 = vmatmul.mubr.bf16.vlgmr.msra.gmra.mxu0 %v1996_v44  ;;  %2073 = vmatmul.mubr.bf16.vlgmr.msra.gmra.mxu1 %v1996_v44 }
 0x831   : > { %v2031_v32 = vpop.f32.mrf.mxu0  ;;  %v2074_v28 = vpop.f32.mrf.mxu1 }
 0x832   : > { %v2083_v25 = vadd.f32 %v2031_v32, %v4202_v7  ;;  %v2085_v60 = vadd.f32 %v2074_v28, %v4207_v59 }
 0x833   : > { %v2033_v21 = vpop.f32.mrf.mxu0  ;;  %v2076_v46 = vpop.f32.mrf.mxu1 }
 0x834   : > { %v2452_v40 = vmul.f32 -1.442695, %v2083_v25  ;;  %v2084_v42 = vadd.f32 %v2033_v21, %v4203_v41  ;;  %v2086_v57 = vadd.f32 %v2076_v46, %v4206_v56 }
 0x835   : > { %v2035_v43 = vpop.f32.mrf.mxu0  ;;  %v2078_v54 = vpop.f32.mrf.mxu1 }
 0x836   : > { %2858 = vpow2.f32 %v2452_v40  ;;  %v2454_v45 = vmul.f32 -1.442695, %v2084_v42  ;;  %v2087_v48 = vadd.f32 %v2035_v43, %v4204_v47  ;;  %v2456_v61 = vmul.f32 -1.442695, %v2086_v57 }
 0x837   : > { %v2037_v49 = vpop.f32.mrf.mxu0  ;;  %v2080_v58 = vpop.f32.mrf.mxu1  ;;  %v2089_v4 = vadd.f32 %v2078_v54, %v4209_v2 }
 0x838   : > { %2860 = vpow2.f32 %v2454_v45  ;;  %v2453_v50 = vmul.f32 -1.442695, %v2087_v48  ;;  %v2088_v52 = vadd.f32 %v2037_v49, %v4205_v51  ;;  %v2090_v0 = vadd.f32 %v2080_v58, %v4208_v63 }
 0x83a   : > { %2862 = vpow2.f32 %v2453_v50  ;;  %v2455_v55 = vmul.f32 -1.442695, %v2088_v52  ;;  %v2457_v10 = vmul.f32 -1.442695, %v2090_v0 }
 0x83c   : > { %2864 = vpow2.f32 %v2455_v55 }
 0x83d   : > { %2866 = vtanh.f32 %v2085_v60 }
 0x83e   : > { %2868 = vpow2.f32 %v2456_v61 }
 0x843   : > { %v2859_v1 = vpop.eup %2858 }
 0x844   : > { %v2097_v5 = vadd.f32 1.0, %v2859_v1 }
 0x845   : > { %v2861_v6 = vpop.eup %2860 }
 0x846   : > { %2870 = vrcp.f32 %v2097_v5  ;;  %v2109_v12 = vadd.f32 1.0, %v2861_v6 }
 0x847   : > { %v2863_v35 = vpop.eup %2862  ;;  %2872 = vtanh.f32 %v2089_v4 }
 0x848   : > { %2874 = vrcp.f32 %v2109_v12  ;;  %v2098_v3 = vadd.f32 1.0, %v2863_v35 }
 0x849   : > { %v2865_v20 = vpop.eup %2864  ;;  %2876 = vpow2.f32 %v2457_v10 }
 0x84a   : > { %2878 = vrcp.f32 %v2098_v3  ;;  %v2110_v34 = vadd.f32 1.0, %v2865_v20  ;;  %v2867_v16 = vpop.eup %2866 }
 0x84b   : > { %v2869_v36 = vpop.eup %2868 }
 0x84c   : > { %2880 = vrcp.f32 %v2110_v34  ;;  %v2123_v9 = vadd.f32 1.0, %v2869_v36 }
 0x84e   : > { %2882 = vrcp.f32 %v2123_v9 }
 0x853   : > { %v2871_v30 = vpop.eup %2870 }
 0x854   : > { %v2873_v17 = vpop.eup %2872  ;;  %v2131_v62 = vmul.f32 %v2871_v30, %v2867_v16 }
 0x855   : > { %v2875_v24 = vpop.eup %2874 }
 0x856   : > { %v2877_v11 = vpop.eup %2876  ;;  %v2129_v15 = vmul.f32 %v2875_v24, %v4038_v29 }
 0x857   : > { %v2879_v18 = vpop.eup %2878  ;;  %v2124_v37 = vadd.f32 1.0, %v2877_v11 }
 0x858   : > { %v2133_v14 = vadd.f32 %v2131_v62, %v2129_v15  ;;  %v2132_v26 = vmul.f32 %v2879_v18, %v2873_v17 }
 0x859   : > { %v2881_v23 = vpop.eup %2880 }
 0x85a   : > { %2884 = vtanh.f32 %v2133_v14  ;;  %2141 = vst [vmem:[#allocation3 + $0x8] sm:$0xff] %v2133_v14  ;;  %v2130_v31 = vmul.f32 %v2881_v23, %v4041_v33 }
 0x85b   : > { %2886 = vrcp.f32 %v2124_v37  ;;  %v2883_v13 = vpop.eup %2882 }
 0x85c   : > { %v2134_v27 = vadd.f32 %v2132_v26, %v2130_v31 }
 0x85e   : > { %2888 = vtanh.f32 %v2134_v27  ;;  %2142 = vst [vmem:[#allocation3] sm:$0xff] %v2134_v27 }
 0x867   : > { %v2885_v53 = vpop.eup %2884 }
 0x868   : > { %v2137_v22 = vmul.f32 %v2885_v53, %v2883_v13  ;;  %v2887_v38 = vpop.eup %2886 }
 0x86a   : > { %2139 = vst [vmem:[#allocation2] sm:$0xff] %v2137_v22  ;;  %2146 = sbr.rel (%p2458_p6) target bundleno = 2392 (0x958), region = 52 }
 0x86b   : > { %v2889_v29 = vpop.eup %2888 }
 0x86c   : > { %v2138_v19 = vmul.f32 %v2889_v29, %v2887_v38 }
 0x86e   : > { %2140 = vst [vmem:[#allocation2 + $0x8] sm:$0xff] %v2138_v19 }
 0x86f   : > { %v2922_v8 = vld [vmem:[%s4102_s4 + $0x38] sm:$0xff]   ;;  %v2956_v33 = vmov 0.0   ;;  %v2923_v39 = vld [vmem:[%s4102_s4 + $0x30] sm:$0xff]   ;;  %vm2957_vm0 = vmmov 0   ;;  %v2924_v44 = vld [vmem:[%s4102_s4 + $0x28] sm:$0xff]   ;;  %v2147_v40 = vpack.c.bf16 %v2138_v19, %v2137_v22 }
 0x870   : > { %2482 = vmatprep.subr.bf16.mxu0 %v2956_v33  ;;  %2498 = vmatprep.mubr.msk.bf16.mxu0 %vm2957_vm0, %v2956_v33  ;;  %v2925_v32 = vld [vmem:[%s4102_s4 + $0x20] sm:$0xff]   ;;  %v2926_v7 = vld [vmem:[%s4102_s4 + $0x18] sm:$0xff]   ;;  %v2927_v25 = vld [vmem:[%s4102_s4 + $0x10] sm:$0xff]  }
 0x871   : > { %2483 = vmatpush3.bf16.msra.mxu0 %v2922_v8  ;;  %v2928_v28 = vld [vmem:[%s4102_s4 + $0x8] sm:$0xff]   ;;  %v2929_v21 = vld [vmem:[%s4102_s4] sm:$0xff]  }
 0x872   : > { %2484 = vmatprep.subr.bf16.mxu0 %v2956_v33  ;;  %v2459_v41 = vld [vmem:[%s4103_s5] ss:$0 sm:$0xff] }
 0x875   : > { %2485 = vmatpush3.bf16.msra.mxu0 %v2923_v39 }
 0x876   : > { %2486 = vmatprep.subr.bf16.mxu0 %v2956_v33 }
 0x879   : > { %2487 = vmatpush3.bf16.msra.mxu0 %v2924_v44 }
 0x87a   : > { %2488 = vmatprep.subr.bf16.mxu0 %v2956_v33 }
 0x87d   : > { %2489 = vmatpush3.bf16.msra.mxu0 %v2925_v32 }
 0x87e   : > { %2490 = vmatprep.subr.bf16.mxu0 %v2956_v33 }
 0x881   : > { %2491 = vmatpush3.bf16.msra.mxu0 %v2926_v7 }
 0x882   : > { %2492 = vmatprep.subr.bf16.mxu0 %v2956_v33 }
 0x885   : > { %2493 = vmatpush3.bf16.msra.mxu0 %v2927_v25 }
 0x886   : > { %2494 = vmatprep.subr.bf16.mxu0 %v2956_v33 }
 0x889   : > { %2495 = vmatpush3.bf16.msra.mxu0 %v2928_v28 }
 0x88a   : > { %2496 = vmatprep.subr.bf16.mxu0 %v2956_v33 }
 0x88d   : > { %2497 = vmatpush3.bf16.msra.mxu0 %v2929_v21 }
 0x890   : > { %2499 = vmatmul.mubr.bf16.vlgmr.msra.gmra.mxu0 %v2147_v40 }
 0x950   : > { %v2253_v42 = vpop.f32.mrf.mxu0 }
 0x951   : > { %v2254_v43 = vadd.f32 %v2459_v41, %v2253_v42 }
 0x952   : > { %v2500_v45 = vpop.f32.mrf.mxu0 }
 0x953   : > { %2260 = vst [vmem:[%s4104_s6] sm:$0xff] %v2254_v43 }
 0x954   : > { %v2256_v46 = vpop.f32.mrf.mxu0 }
 0x955   : > { %v2257_v47 = vadd.f32 %v2459_v41, %v2256_v46 }
 0x956   : > { %v2501_v48 = vpop.f32.mrf.mxu0 }
 0x957   : > { %2261 = vst [vmem:[%s4104_s6 + $0x8] sm:$0xff] %v2257_v47 }
 0x958 PF: > { %s16_s23 = sadd.s32 1, %s2952_s23   ;;  %s4210_s21 = smov %s2948_s22 }
 0x959   : > { %p13_p7 = scmp.ge.s32.totalorder %s16_s23, 4   ;;  %s4211_s22 = smov %s4213_s24 }
 0x95b   :  { %15 = sbr.rel (!%p13_p7) target bundleno = 2 (0x2), region = 82 }

</bundles_post_ra>
